<compile_context>
chip_gen: v5e
topology: v5e:2x2
jax: 0.10.0
libtpu: 0.0.40
codegen_flags: <defaults>
</compile_context>

<pallas_src>
import functools

import jax
import jax.numpy as jnp
from jax.experimental import pallas as pl
from jax.experimental.pallas import tpu as pltpu

EPS = 1e-8  # matches eps=1e-08 of nn.GroupNorm in the module


def _round_up(x, m):
    return (x + m - 1) // m * m


def depthconv1d_kernel(x_ref, w1_ref, chan_ref, prelu_ref, wout_ref, bout_ref,
                       sel_ref, segt_ref, mrows_ref, res_ref, skip_ref,
                       *, kernel, dilation, padding, n_samples, lane_per_sample,
                       t_valid, t_out):
    H = w1_ref.shape[0]
    cin = res_ref.shape[1]
    B_blk = n_samples
    S = lane_per_sample

    x = x_ref[...]                     # (Cin, B_blk*S); zeros beyond each sample's t_valid
    chan = chan_ref[...]               # (H, 4+K): loaded ONCE, sliced in-register below
    sel = sel_ref[...]                 # (B_blk*S, 2*B_blk): [in-masked one-hot | out-masked one-hot]
    segt = segt_ref[...]               # (B_blk, B_blk*S): plain segment indicator (broadcast)
    mrows = mrows_ref[...]             # (2, B_blk*S): [input mask ; output mask] (f32 0/1)
    m_in = mrows[0:1]
    m_out = mrows[1:2]
    b1 = chan[:, 0:1]
    g1 = chan[:, 1:2]
    be1 = chan[:, 2:3]
    bd = chan[:, 3:4]
    a1 = prelu_ref[0]
    a2 = prelu_ref[1]

    nt = x.shape[1]

    # ---- pointwise conv1d: (H, Cin) @ (Cin, B_blk*S) + bias, then PReLU1 ----
    y = jnp.dot(w1_ref[...], x, preferred_element_type=jnp.float32) + b1
    y = jnp.where(y > 0, y, a1 * y)

    # ---- per-sample GroupNorm(1, H) statistics.
    # Lane reductions ride the MXU via the masked segment selector; only the
    # small (H, 2*B_blk) sublane reduce stays on the XLU.  Single-pass
    # E[x^2]-mean^2 (fine at ~unit scale; note for large-magnitude activations).
    def seg_stats(v, cols, inv_n):
        lane_s = jnp.dot(v, sel, preferred_element_type=jnp.float32)       # (H, 2*B_blk)
        lane_q = jnp.dot(v * v, sel, preferred_element_type=jnp.float32)   # (H, 2*B_blk)
        s = jnp.sum(lane_s, axis=0, keepdims=True)[:, cols]                # (1, B_blk)
        q = jnp.sum(lane_q, axis=0, keepdims=True)[:, cols]                # (1, B_blk)
        mean = s * inv_n
        istd = jax.lax.rsqrt(q * inv_n - mean * mean + EPS)
        # broadcast per-sample stats back onto the lanes with one tiny matmul
        mv = jnp.dot(jnp.concatenate([mean, istd], axis=0), segt,
                     preferred_element_type=jnp.float32)                   # (2, B_blk*S)
        return mv[0:1], mv[1:2]

    mean1, istd1 = seg_stats(y, slice(0, B_blk), 1.0 / (H * t_valid))
    # normalize + affine; zero the per-sample lane slack so the rotations below
    # reproduce the depthwise conv's zero padding (and never mix samples).
    y = ((y - mean1) * istd1 * g1 + be1) * m_in

    # ---- depthwise conv (groups=H): K static lane rotations (XLU), no scratch.
    # tap_k[t] = y_zeropad[t + k*dilation - padding]; every wrap-around lands in
    # a zeroed slack region (S >= t_valid + padding), matching zero padding.
    z = jnp.zeros((H, nt), jnp.float32)
    for k in range(kernel):
        shift = (padding - k * dilation) % nt
        tap = y if shift == 0 else pltpu.roll(y, shift=shift, axis=1)
        z = z + chan[:, 4 + k:5 + k] * tap
    z = z + bd

    # ---- PReLU2 ----
    z = jnp.where(z > 0, z, a2 * z)

    # ---- GroupNorm2: stats only (affine already folded into wout/bout) ----
    mean2, istd2 = seg_stats(z, slice(B_blk, 2 * B_blk), 1.0 / (H * t_out))
    zn = (z - mean2) * istd2 * m_out   # masked: no slack garbage reaches the output

    # ---- fused residual + skip 1x1 convs: one (2*Cin, H) @ (H, B_blk*S) ----
    full = (jnp.dot(wout_ref[...], zn, preferred_element_type=jnp.float32)
            + bout_ref[...])                                   # (2*Cin, B_blk*S)

    # per-sample stores (128-lane aligned slices -> plain vreg stores)
    for b in range(B_blk):
        blk = full[:, b * S:(b + 1) * S]                       # (2*Cin, S)
        res_ref[b] = blk[:cin].astype(res_ref.dtype)
        skip_ref[b] = blk[cin:].astype(skip_ref.dtype)


def depthconv1d(x, params, *, kernel, dilation, padding, samples_per_step=None):
    B, Cin, T = x.shape
    H = params["w1"].shape[0]
    T_out = T + 2 * padding - dilation * (kernel - 1)
    # Per-sample lane width: multiple of 128 with >= `padding` zero slack so the
    # circular lane rotations emulate the depthwise conv's zero padding.
    S = _round_up(max(T + padding, T_out, 128), 128)
    # roll-as-zero-padding invariant (guards the depthwise-conv trick)
    assert S >= T + padding and S >= T_out, "lane width must cover T+padding and T_out"

    # Samples per grid step: amortize per-step pipeline overhead, but keep
    # (at least) 2 parallel steps so both v7x TensorCores stay busy.
    if samples_per_step is None:
        samples_per_step = B // 2 if (B % 2 == 0 and B >= 2) else B
    B_blk = samples_per_step
    assert B % B_blk == 0, "batch must be divisible by samples_per_step"
    n_steps = B // B_blk
    Nt = B_blk * S
    f32 = jnp.float32

    # ---- lane-dense input slab: (Cin, B*S), zeros beyond each sample's T ----
    x_pad = jnp.pad(x, ((0, 0), (0, 0), (0, S - T)))
    x_flat = jnp.transpose(x_pad, (1, 0, 2)).reshape(Cin, B * S)

    # ---- consolidated per-channel params: [b1 | g1 | be1 | bd | wd] ----
    chan = jnp.concatenate([params["b1"], params["g1"], params["be1"],
                            params["bd"], params["wd"]], axis=1)
    # PReLU scalars live in SMEM.
    prelu = jnp.stack([params["a1"][0, 0], params["a2"][0, 0]])

    # Fold the GroupNorm2 affine into the fused res/skip conv weights:
    #   w' = w * g2^T ,  b' = b + w @ be2
    g2 = params["g2"][:, 0]
    wout = jnp.concatenate([params["wres"] * g2[None, :],
                            params["wskip"] * g2[None, :]], axis=0)
    bout = jnp.concatenate([params["bres"] + params["wres"] @ params["be2"],
                            params["bskip"] + params["wskip"] @ params["be2"]],
                           axis=0)

    # ---- per-lane masks / segment selectors (tiny constants, built once) ----
    pos = jnp.arange(Nt, dtype=jnp.int32) % S        # within-sample lane position
    seg_id = jnp.arange(Nt, dtype=jnp.int32) // S    # which sample owns the lane
    m_in_row = (pos < T).astype(f32)[None, :]        # (1, Nt)
    m_out_row = (pos < T_out).astype(f32)[None, :]   # (1, Nt)
    mrows = jnp.concatenate([m_in_row, m_out_row], axis=0)                 # (2, Nt)
    onehot = (seg_id[:, None] == jnp.arange(B_blk)[None, :]).astype(f32)   # (Nt, B_blk)
    sel_cat = jnp.concatenate([onehot * m_in_row.T, onehot * m_out_row.T],
                              axis=1)                                      # (Nt, 2*B_blk)
    segt = jnp.transpose(onehot)                                           # (B_blk, Nt)

    kern = functools.partial(depthconv1d_kernel, kernel=kernel,
                             dilation=dilation, padding=padding,
                             n_samples=B_blk, lane_per_sample=S,
                             t_valid=T, t_out=T_out)

    grid_spec = pltpu.PrefetchScalarGridSpec(
        num_scalar_prefetch=0,
        grid=(n_steps,),
        in_specs=[
            pl.BlockSpec((Cin, Nt), lambda g: (0, g)),
            pl.BlockSpec(params["w1"].shape, lambda g: (0, 0)),
            pl.BlockSpec(chan.shape, lambda g: (0, 0)),
            pl.BlockSpec(memory_space=pltpu.MemorySpace.SMEM),
            pl.BlockSpec(wout.shape, lambda g: (0, 0)),
            pl.BlockSpec(bout.shape, lambda g: (0, 0)),
            pl.BlockSpec(sel_cat.shape, lambda g: (0, 0)),
            pl.BlockSpec(segt.shape, lambda g: (0, 0)),
            pl.BlockSpec(mrows.shape, lambda g: (0, 0)),
        ],
        out_specs=[
            pl.BlockSpec((B_blk, Cin, S), lambda g: (g, 0, 0)),
            pl.BlockSpec((B_blk, Cin, S), lambda g: (g, 0, 0)),
        ],
    )

    res_pad, skip_pad = pl.pallas_call(
        kern,
        out_shape=(jax.ShapeDtypeStruct((B, Cin, S), x.dtype),
                   jax.ShapeDtypeStruct((B, Cin, S), x.dtype)),
        grid_spec=grid_spec,
        compiler_params=pltpu.CompilerParams(
            dimension_semantics=("parallel",),
            vmem_limit_bytes=32 * 1024 * 1024),
    )(x_flat, params["w1"], chan, prelu, wout, bout, sel_cat, segt, mrows)

    # res/skip already come out as separate tensors (no channel-split copy);
    # only the lane padding is trimmed here (downstream consumers that accept
    # padded time can take res_pad/skip_pad directly).
    return res_pad[:, :, :T_out], skip_pad[:, :, :T_out]


def reference(x, p, *, kernel, dilation, padding):
    """Pure-JAX reference of the PyTorch forward (non-causal, skip=True)."""
    T = x.shape[2]
    T_out = T + 2 * padding - dilation * (kernel - 1)
    y = jnp.einsum("hc,bct->bht", p["w1"], x) + p["b1"][None]
    y = jnp.where(y > 0, y, p["a1"][0, 0] * y)
    m = y.mean(axis=(1, 2), keepdims=True)
    v = ((y - m) ** 2).mean(axis=(1, 2), keepdims=True)
    y = (y - m) / jnp.sqrt(v + EPS) * p["g1"][None] + p["be1"][None]
    ypad = jnp.pad(y, ((0, 0), (0, 0), (padding, padding)))
    z = p["bd"][None] * jnp.ones((x.shape[0], 1, T_out), x.dtype)
    for k in range(kernel):
        z = z + p["wd"][None, :, k:k + 1] * ypad[:, :, k * dilation:k * dilation + T_out]
    z = jnp.where(z > 0, z, p["a2"][0, 0] * z)
    m = z.mean(axis=(1, 2), keepdims=True)
    v = ((z - m) ** 2).mean(axis=(1, 2), keepdims=True)
    z = (z - m) / jnp.sqrt(v + EPS) * p["g2"][None] + p["be2"][None]
    res = jnp.einsum("ch,bht->bct", p["wres"], z) + p["bres"][None]
    skip = jnp.einsum("ch,bht->bct", p["wskip"], z) + p["bskip"][None]
    return res, skip


def make_params(key, input_channel, hidden_channel, kernel):
    ks = jax.random.split(key, 12)
    f32 = jnp.float32
    return {
        # nn.Conv1d(input_channel, hidden_channel, 1): weight (H, Cin, 1) -> (H, Cin)
        "w1": 0.1 * jax.random.normal(ks[0], (hidden_channel, input_channel), f32),
        "b1": 0.1 * jax.random.normal(ks[1], (hidden_channel, 1), f32),
        # nn.PReLU() default single alpha = 0.25
        "a1": jnp.full((1, 1), 0.25, f32),
        # nn.GroupNorm(1, H) affine params (randomized here to exercise folding)
        "g1": 1.0 + 0.1 * jax.random.normal(ks[2], (hidden_channel, 1), f32),
        "be1": 0.1 * jax.random.normal(ks[3], (hidden_channel, 1), f32),
        # depthwise nn.Conv1d(H, H, K, groups=H): weight (H, 1, K) -> (H, K)
        "wd": 0.1 * jax.random.normal(ks[4], (hidden_channel, kernel), f32),
        "bd": 0.1 * jax.random.normal(ks[5], (hidden_channel, 1), f32),
        "a2": jnp.full((1, 1), 0.2, f32),
        "g2": 1.0 + 0.1 * jax.random.normal(ks[6], (hidden_channel, 1), f32),
        "be2": 0.1 * jax.random.normal(ks[7], (hidden_channel, 1), f32),
        # res_out / skip_out: nn.Conv1d(H, Cin, 1)
        "wres": 0.1 * jax.random.normal(ks[8], (input_channel, hidden_channel), f32),
        "bres": 0.1 * jax.random.normal(ks[9], (input_channel, 1), f32),
        "wskip": 0.1 * jax.random.normal(ks[10], (input_channel, hidden_channel), f32),
        "bskip": 0.1 * jax.random.normal(ks[11], (input_channel, 1), f32),
    }


if __name__ == "__main__":
    # DepthConv1d(input_channel=8, hidden_channel=32, kernel=3,
    #             padding=2, dilation=2, skip=True, causal=False)
    B, Cin, H, T = 4, 8, 32, 96          # B=4 -> 2 grid steps x 2 samples (N=256)
    K, DIL, PAD = 3, 2, 2

    key = jax.random.PRNGKey(0)
    kx, kp = jax.random.split(key)
    x = jax.random.normal(kx, (B, Cin, T), jnp.float32)
    params = make_params(kp, Cin, H, K)

    res, skip = depthconv1d(x, params, kernel=K, dilation=DIL, padding=PAD)
    jax.block_until_ready(res)
    jax.block_until_ready(skip)

    res_ref, skip_ref = reference(x, params, kernel=K, dilation=DIL, padding=PAD)
    assert res.shape == res_ref.shape and skip.shape == skip_ref.shape
    assert jnp.allclose(res, res_ref, rtol=1e-4, atol=1e-4), "residual mismatch"
    assert jnp.allclose(skip, skip_ref, rtol=1e-4, atol=1e-4), "skip mismatch"

    print("KERNEL_OK")
</pallas_src>

<mosaic_0001>
module attributes {stable_mosaic.version = 11 : i64} {
  func.func @depthconv1d_kernel(%arg0: i32, %arg1: memref<8x256xf32, #tpu.memory_space<vmem>>, %arg2: memref<32x8xf32, #tpu.memory_space<vmem>>, %arg3: memref<32x7xf32, #tpu.memory_space<vmem>>, %arg4: memref<2xf32, #tpu.memory_space<smem>>, %arg5: memref<16x32xf32, #tpu.memory_space<vmem>>, %arg6: memref<16x1xf32, #tpu.memory_space<vmem>>, %arg7: memref<256x4xf32, #tpu.memory_space<vmem>>, %arg8: memref<2x256xf32, #tpu.memory_space<vmem>>, %arg9: memref<2x256xf32, #tpu.memory_space<vmem>>, %arg10: memref<2x8x128xf32, #tpu.memory_space<vmem>>, %arg11: memref<2x8x128xf32, #tpu.memory_space<vmem>>) attributes {dimension_semantics = [#tpu.dimension_semantics<parallel>], iteration_bounds = array<i64: 2>, scalar_prefetch = 0 : i64, scratch_operands = 0 : i64, tpu.core_type = #tpu.core_type<tc>, window_params = [{transform_indices = @transform_0, window_bounds = array<i64: 8, 256>}, {pipeline_mode = #tpu.pipeline_mode<synchronous>, transform_indices = @transform_1, window_bounds = array<i64: 32, 8>}, {pipeline_mode = #tpu.pipeline_mode<synchronous>, transform_indices = @transform_2, window_bounds = array<i64: 32, 7>}, {transform_indices = @transform_3, window_bounds = array<i64: 2>}, {pipeline_mode = #tpu.pipeline_mode<synchronous>, transform_indices = @transform_4, window_bounds = array<i64: 16, 32>}, {pipeline_mode = #tpu.pipeline_mode<synchronous>, transform_indices = @transform_5, window_bounds = array<i64: 16, 1>}, {pipeline_mode = #tpu.pipeline_mode<synchronous>, transform_indices = @transform_6, window_bounds = array<i64: 256, 4>}, {pipeline_mode = #tpu.pipeline_mode<synchronous>, transform_indices = @transform_7, window_bounds = array<i64: 2, 256>}, {pipeline_mode = #tpu.pipeline_mode<synchronous>, transform_indices = @transform_8, window_bounds = array<i64: 2, 256>}, {transform_indices = @transform_9, window_bounds = array<i64: 2, 8, 128>}, {transform_indices = @transform_10, window_bounds = array<i64: 2, 8, 128>}]} {
    %c0 = arith.constant 0 : index
    %c0_0 = arith.constant 0 : index
    %0 = vector.load %arg1[%c0, %c0_0] : memref<8x256xf32, #tpu.memory_space<vmem>>, vector<8x256xf32>
    %c0_1 = arith.constant 0 : index
    %c0_2 = arith.constant 0 : index
    %1 = vector.load %arg3[%c0_1, %c0_2] : memref<32x7xf32, #tpu.memory_space<vmem>>, vector<32x7xf32>
    %c0_3 = arith.constant 0 : index
    %c0_4 = arith.constant 0 : index
    %2 = vector.load %arg7[%c0_3, %c0_4] : memref<256x4xf32, #tpu.memory_space<vmem>>, vector<256x4xf32>
    %c0_5 = arith.constant 0 : index
    %c0_6 = arith.constant 0 : index
    %3 = vector.load %arg8[%c0_5, %c0_6] : memref<2x256xf32, #tpu.memory_space<vmem>>, vector<2x256xf32>
    %c0_7 = arith.constant 0 : index
    %c0_8 = arith.constant 0 : index
    %4 = vector.load %arg9[%c0_7, %c0_8] : memref<2x256xf32, #tpu.memory_space<vmem>>, vector<2x256xf32>
    %5 = vector.extract_strided_slice %4 {offsets = [0, 0], sizes = [1, 256], strides = [1, 1]} : vector<2x256xf32> to vector<1x256xf32>
    %6 = vector.extract_strided_slice %4 {offsets = [1, 0], sizes = [1, 256], strides = [1, 1]} : vector<2x256xf32> to vector<1x256xf32>
    %7 = vector.extract_strided_slice %1 {offsets = [0, 0], sizes = [32, 1], strides = [1, 1]} : vector<32x7xf32> to vector<32x1xf32>
    %8 = vector.extract_strided_slice %1 {offsets = [0, 1], sizes = [32, 1], strides = [1, 1]} : vector<32x7xf32> to vector<32x1xf32>
    %9 = vector.extract_strided_slice %1 {offsets = [0, 2], sizes = [32, 1], strides = [1, 1]} : vector<32x7xf32> to vector<32x1xf32>
    %10 = vector.extract_strided_slice %1 {offsets = [0, 3], sizes = [32, 1], strides = [1, 1]} : vector<32x7xf32> to vector<32x1xf32>
    %c0_9 = arith.constant 0 : index
    %11 = memref.load %arg4[%c0_9] : memref<2xf32, #tpu.memory_space<smem>>
    %c1 = arith.constant 1 : index
    %12 = memref.load %arg4[%c1] : memref<2xf32, #tpu.memory_space<smem>>
    %c0_10 = arith.constant 0 : index
    %c0_11 = arith.constant 0 : index
    %13 = vector.load %arg2[%c0_10, %c0_11] : memref<32x8xf32, #tpu.memory_space<vmem>>, vector<32x8xf32>
    %cst = arith.constant dense<0.000000e+00> : vector<32x256xf32>
    %14 = tpu.matmul %13, %0, %cst {dimension_numbers = #tpu.dot_dimension_numbers<[1], [0], [0], [1], [0, 0, 1, 1], [], []>} : vector<32x8xf32>, vector<8x256xf32>, vector<32x256xf32> -> vector<32x256xf32>
    %15 = vector.broadcast %7 : vector<32x1xf32> to vector<32x256xf32>
    %16 = arith.addf %14, %15 : vector<32x256xf32>
    %cst_12 = arith.constant 0.000000e+00 : f32
    %17 = vector.broadcast %cst_12 : f32 to vector<32x256xf32>
    %18 = arith.cmpf ogt, %16, %17 : vector<32x256xf32>
    %19 = vector.broadcast %11 : f32 to vector<32x256xf32>
    %20 = arith.mulf %19, %16 : vector<32x256xf32>
    %21 = arith.select %18, %16, %20 : vector<32x256xi1>, vector<32x256xf32>
    %cst_13 = arith.constant dense<0.000000e+00> : vector<32x4xf32>
    %22 = tpu.matmul %21, %2, %cst_13 {dimension_numbers = #tpu.dot_dimension_numbers<[1], [0], [0], [1], [0, 0, 1, 1], [], []>} : vector<32x256xf32>, vector<256x4xf32>, vector<32x4xf32> -> vector<32x4xf32>
    %23 = arith.mulf %21, %21 : vector<32x256xf32>
    %cst_14 = arith.constant dense<0.000000e+00> : vector<32x4xf32>
    %24 = tpu.matmul %23, %2, %cst_14 {dimension_numbers = #tpu.dot_dimension_numbers<[1], [0], [0], [1], [0, 0, 1, 1], [], []>} : vector<32x256xf32>, vector<256x4xf32>, vector<32x4xf32> -> vector<32x4xf32>
    %cst_15 = arith.constant dense<0.000000e+00> : vector<4xf32>
    %25 = vector.multi_reduction <add>, %22, %cst_15 [0] : vector<32x4xf32> to vector<4xf32>
    %26 = vector.shape_cast %25 : vector<4xf32> to vector<1x4xf32>
    %27 = vector.extract_strided_slice %26 {offsets = [0, 0], sizes = [1, 2], strides = [1, 1]} : vector<1x4xf32> to vector<1x2xf32>
    %cst_16 = arith.constant dense<0.000000e+00> : vector<4xf32>
    %28 = vector.multi_reduction <add>, %24, %cst_16 [0] : vector<32x4xf32> to vector<4xf32>
    %29 = vector.shape_cast %28 : vector<4xf32> to vector<1x4xf32>
    %30 = vector.extract_strided_slice %29 {offsets = [0, 0], sizes = [1, 2], strides = [1, 1]} : vector<1x4xf32> to vector<1x2xf32>
    %cst_17 = arith.constant 3.25520843E-4 : f32
    %31 = vector.broadcast %cst_17 : f32 to vector<1x2xf32>
    %32 = arith.mulf %27, %31 : vector<1x2xf32>
    %cst_18 = arith.constant 3.25520843E-4 : f32
    %33 = vector.broadcast %cst_18 : f32 to vector<1x2xf32>
    %34 = arith.mulf %30, %33 : vector<1x2xf32>
    %35 = arith.mulf %32, %32 : vector<1x2xf32>
    %36 = arith.subf %34, %35 : vector<1x2xf32>
    %cst_19 = arith.constant 9.99999993E-9 : f32
    %37 = vector.broadcast %cst_19 : f32 to vector<1x2xf32>
    %38 = arith.addf %36, %37 : vector<1x2xf32>
    %39 = math.rsqrt %38 : vector<1x2xf32>
    %40 = tpu.concatenate %32, %39 in 0 : vector<1x2xf32>, vector<1x2xf32> -> vector<2x2xf32>
    %cst_20 = arith.constant dense<0.000000e+00> : vector<2x256xf32>
    %41 = tpu.matmul %40, %3, %cst_20 {dimension_numbers = #tpu.dot_dimension_numbers<[1], [0], [0], [1], [0, 0, 1, 1], [], []>} : vector<2x2xf32>, vector<2x256xf32>, vector<2x256xf32> -> vector<2x256xf32>
    %42 = vector.extract_strided_slice %41 {offsets = [0, 0], sizes = [1, 256], strides = [1, 1]} : vector<2x256xf32> to vector<1x256xf32>
    %43 = vector.extract_strided_slice %41 {offsets = [1, 0], sizes = [1, 256], strides = [1, 1]} : vector<2x256xf32> to vector<1x256xf32>
    %44 = vector.broadcast %42 : vector<1x256xf32> to vector<32x256xf32>
    %45 = arith.subf %21, %44 : vector<32x256xf32>
    %46 = vector.broadcast %43 : vector<1x256xf32> to vector<32x256xf32>
    %47 = arith.mulf %45, %46 : vector<32x256xf32>
    %48 = vector.broadcast %8 : vector<32x1xf32> to vector<32x256xf32>
    %49 = arith.mulf %47, %48 : vector<32x256xf32>
    %50 = vector.broadcast %9 : vector<32x1xf32> to vector<32x256xf32>
    %51 = arith.addf %49, %50 : vector<32x256xf32>
    %52 = vector.broadcast %5 : vector<1x256xf32> to vector<32x256xf32>
    %53 = arith.mulf %51, %52 : vector<32x256xf32>
    %cst_21 = arith.constant 0.000000e+00 : f32
    %54 = vector.broadcast %cst_21 : f32 to vector<32x256xf32>
    %c2_i32 = arith.constant 2 : i32
    %55 = tpu.dynamic_rotate %53 by %c2_i32 dim 1 : vector<32x256xf32>, i32 -> vector<32x256xf32>
    %56 = vector.extract_strided_slice %1 {offsets = [0, 4], sizes = [32, 1], strides = [1, 1]} : vector<32x7xf32> to vector<32x1xf32>
    %57 = vector.broadcast %56 : vector<32x1xf32> to vector<32x256xf32>
    %58 = arith.mulf %57, %55 : vector<32x256xf32>
    %59 = arith.addf %54, %58 : vector<32x256xf32>
    %60 = vector.extract_strided_slice %1 {offsets = [0, 5], sizes = [32, 1], strides = [1, 1]} : vector<32x7xf32> to vector<32x1xf32>
    %61 = vector.broadcast %60 : vector<32x1xf32> to vector<32x256xf32>
    %62 = arith.mulf %61, %53 : vector<32x256xf32>
    %63 = arith.addf %59, %62 : vector<32x256xf32>
    %c254_i32 = arith.constant 254 : i32
    %64 = tpu.dynamic_rotate %53 by %c254_i32 dim 1 : vector<32x256xf32>, i32 -> vector<32x256xf32>
    %65 = vector.extract_strided_slice %1 {offsets = [0, 6], sizes = [32, 1], strides = [1, 1]} : vector<32x7xf32> to vector<32x1xf32>
    %66 = vector.broadcast %65 : vector<32x1xf32> to vector<32x256xf32>
    %67 = arith.mulf %66, %64 : vector<32x256xf32>
    %68 = arith.addf %63, %67 : vector<32x256xf32>
    %69 = vector.broadcast %10 : vector<32x1xf32> to vector<32x256xf32>
    %70 = arith.addf %68, %69 : vector<32x256xf32>
    %cst_22 = arith.constant 0.000000e+00 : f32
    %71 = vector.broadcast %cst_22 : f32 to vector<32x256xf32>
    %72 = arith.cmpf ogt, %70, %71 : vector<32x256xf32>
    %73 = vector.broadcast %12 : f32 to vector<32x256xf32>
    %74 = arith.mulf %73, %70 : vector<32x256xf32>
    %75 = arith.select %72, %70, %74 : vector<32x256xi1>, vector<32x256xf32>
    %cst_23 = arith.constant dense<0.000000e+00> : vector<32x4xf32>
    %76 = tpu.matmul %75, %2, %cst_23 {dimension_numbers = #tpu.dot_dimension_numbers<[1], [0], [0], [1], [0, 0, 1, 1], [], []>} : vector<32x256xf32>, vector<256x4xf32>, vector<32x4xf32> -> vector<32x4xf32>
    %77 = arith.mulf %75, %75 : vector<32x256xf32>
    %cst_24 = arith.constant dense<0.000000e+00> : vector<32x4xf32>
    %78 = tpu.matmul %77, %2, %cst_24 {dimension_numbers = #tpu.dot_dimension_numbers<[1], [0], [0], [1], [0, 0, 1, 1], [], []>} : vector<32x256xf32>, vector<256x4xf32>, vector<32x4xf32> -> vector<32x4xf32>
    %cst_25 = arith.constant dense<0.000000e+00> : vector<4xf32>
    %79 = vector.multi_reduction <add>, %76, %cst_25 [0] : vector<32x4xf32> to vector<4xf32>
    %80 = vector.shape_cast %79 : vector<4xf32> to vector<1x4xf32>
    %81 = vector.extract_strided_slice %80 {offsets = [0, 2], sizes = [1, 2], strides = [1, 1]} : vector<1x4xf32> to vector<1x2xf32>
    %cst_26 = arith.constant dense<0.000000e+00> : vector<4xf32>
    %82 = vector.multi_reduction <add>, %78, %cst_26 [0] : vector<32x4xf32> to vector<4xf32>
    %83 = vector.shape_cast %82 : vector<4xf32> to vector<1x4xf32>
    %84 = vector.extract_strided_slice %83 {offsets = [0, 2], sizes = [1, 2], strides = [1, 1]} : vector<1x4xf32> to vector<1x2xf32>
    %cst_27 = arith.constant 3.25520843E-4 : f32
    %85 = vector.broadcast %cst_27 : f32 to vector<1x2xf32>
    %86 = arith.mulf %81, %85 : vector<1x2xf32>
    %cst_28 = arith.constant 3.25520843E-4 : f32
    %87 = vector.broadcast %cst_28 : f32 to vector<1x2xf32>
    %88 = arith.mulf %84, %87 : vector<1x2xf32>
    %89 = arith.mulf %86, %86 : vector<1x2xf32>
    %90 = arith.subf %88, %89 : vector<1x2xf32>
    %cst_29 = arith.constant 9.99999993E-9 : f32
    %91 = vector.broadcast %cst_29 : f32 to vector<1x2xf32>
    %92 = arith.addf %90, %91 : vector<1x2xf32>
    %93 = math.rsqrt %92 : vector<1x2xf32>
    %94 = tpu.concatenate %86, %93 in 0 : vector<1x2xf32>, vector<1x2xf32> -> vector<2x2xf32>
    %cst_30 = arith.constant dense<0.000000e+00> : vector<2x256xf32>
    %95 = tpu.matmul %94, %3, %cst_30 {dimension_numbers = #tpu.dot_dimension_numbers<[1], [0], [0], [1], [0, 0, 1, 1], [], []>} : vector<2x2xf32>, vector<2x256xf32>, vector<2x256xf32> -> vector<2x256xf32>
    %96 = vector.extract_strided_slice %95 {offsets = [0, 0], sizes = [1, 256], strides = [1, 1]} : vector<2x256xf32> to vector<1x256xf32>
    %97 = vector.extract_strided_slice %95 {offsets = [1, 0], sizes = [1, 256], strides = [1, 1]} : vector<2x256xf32> to vector<1x256xf32>
    %98 = vector.broadcast %96 : vector<1x256xf32> to vector<32x256xf32>
    %99 = arith.subf %75, %98 : vector<32x256xf32>
    %100 = vector.broadcast %97 : vector<1x256xf32> to vector<32x256xf32>
    %101 = arith.mulf %99, %100 : vector<32x256xf32>
    %102 = vector.broadcast %6 : vector<1x256xf32> to vector<32x256xf32>
    %103 = arith.mulf %101, %102 : vector<32x256xf32>
    %c0_31 = arith.constant 0 : index
    %c0_32 = arith.constant 0 : index
    %104 = vector.load %arg5[%c0_31, %c0_32] : memref<16x32xf32, #tpu.memory_space<vmem>>, vector<16x32xf32>
    %cst_33 = arith.constant dense<0.000000e+00> : vector<16x256xf32>
    %105 = tpu.matmul %104, %103, %cst_33 {dimension_numbers = #tpu.dot_dimension_numbers<[1], [0], [0], [1], [0, 0, 1, 1], [], []>} : vector<16x32xf32>, vector<32x256xf32>, vector<16x256xf32> -> vector<16x256xf32>
    %c0_34 = arith.constant 0 : index
    %c0_35 = arith.constant 0 : index
    %106 = vector.load %arg6[%c0_34, %c0_35] : memref<16x1xf32, #tpu.memory_space<vmem>>, vector<16x1xf32>
    %107 = vector.broadcast %106 : vector<16x1xf32> to vector<16x256xf32>
    %108 = arith.addf %105, %107 : vector<16x256xf32>
    %109 = vector.extract_strided_slice %108 {offsets = [0, 0], sizes = [16, 128], strides = [1, 1]} : vector<16x256xf32> to vector<16x128xf32>
    %110 = vector.extract_strided_slice %109 {offsets = [0, 0], sizes = [8, 128], strides = [1, 1]} : vector<16x128xf32> to vector<8x128xf32>
    %c0_36 = arith.constant 0 : index
    %c0_37 = arith.constant 0 : index
    %c0_38 = arith.constant 0 : index
    %111 = vector.load %arg10[%c0_36, %c0_37, %c0_38] : memref<2x8x128xf32, #tpu.memory_space<vmem>>, vector<1x8x128xf32>
    %112 = vector.shape_cast %111 : vector<1x8x128xf32> to vector<8x128xf32>
    %113 = vector.shape_cast %110 : vector<8x128xf32> to vector<1x8x128xf32>
    tpu.vector_store %arg10[%c0_36, %c0_37, %c0_38], %113 {strides = array<i32>} : memref<2x8x128xf32, #tpu.memory_space<vmem>>, vector<1x8x128xf32>,
    %114 = vector.extract_strided_slice %109 {offsets = [8, 0], sizes = [8, 128], strides = [1, 1]} : vector<16x128xf32> to vector<8x128xf32>
    %c0_39 = arith.constant 0 : index
    %c0_40 = arith.constant 0 : index
    %c0_41 = arith.constant 0 : index
    %115 = vector.load %arg11[%c0_39, %c0_40, %c0_41] : memref<2x8x128xf32, #tpu.memory_space<vmem>>, vector<1x8x128xf32>
    %116 = vector.shape_cast %115 : vector<1x8x128xf32> to vector<8x128xf32>
    %117 = vector.shape_cast %114 : vector<8x128xf32> to vector<1x8x128xf32>
    tpu.vector_store %arg11[%c0_39, %c0_40, %c0_41], %117 {strides = array<i32>} : memref<2x8x128xf32, #tpu.memory_space<vmem>>, vector<1x8x128xf32>,
    %118 = vector.extract_strided_slice %108 {offsets = [0, 128], sizes = [16, 128], strides = [1, 1]} : vector<16x256xf32> to vector<16x128xf32>
    %119 = vector.extract_strided_slice %118 {offsets = [0, 0], sizes = [8, 128], strides = [1, 1]} : vector<16x128xf32> to vector<8x128xf32>
    %c1_42 = arith.constant 1 : index
    %c0_43 = arith.constant 0 : index
    %c0_44 = arith.constant 0 : index
    %120 = vector.load %arg10[%c1_42, %c0_43, %c0_44] : memref<2x8x128xf32, #tpu.memory_space<vmem>>, vector<1x8x128xf32>
    %121 = vector.shape_cast %120 : vector<1x8x128xf32> to vector<8x128xf32>
    %122 = vector.shape_cast %119 : vector<8x128xf32> to vector<1x8x128xf32>
    tpu.vector_store %arg10[%c1_42, %c0_43, %c0_44], %122 {strides = array<i32>} : memref<2x8x128xf32, #tpu.memory_space<vmem>>, vector<1x8x128xf32>,
    %123 = vector.extract_strided_slice %118 {offsets = [8, 0], sizes = [8, 128], strides = [1, 1]} : vector<16x128xf32> to vector<8x128xf32>
    %c1_45 = arith.constant 1 : index
    %c0_46 = arith.constant 0 : index
    %c0_47 = arith.constant 0 : index
    %124 = vector.load %arg11[%c1_45, %c0_46, %c0_47] : memref<2x8x128xf32, #tpu.memory_space<vmem>>, vector<1x8x128xf32>
    %125 = vector.shape_cast %124 : vector<1x8x128xf32> to vector<8x128xf32>
    %126 = vector.shape_cast %123 : vector<8x128xf32> to vector<1x8x128xf32>
    tpu.vector_store %arg11[%c1_45, %c0_46, %c0_47], %126 {strides = array<i32>} : memref<2x8x128xf32, #tpu.memory_space<vmem>>, vector<1x8x128xf32>,
    return
  }
  func.func @transform_0(%arg0: i32) -> (i32, i32) {
    %c0_i32 = arith.constant 0 : i32
    %c0_i32_0 = arith.constant 0 : i32
    return %c0_i32, %arg0 : i32, i32
  }
  func.func @transform_1(%arg0: i32) -> (i32, i32) {
    %c0_i32 = arith.constant 0 : i32
    %c0_i32_0 = arith.constant 0 : i32
    %c0_i32_1 = arith.constant 0 : i32
    return %c0_i32, %c0_i32_0 : i32, i32
  }
  func.func @transform_2(%arg0: i32) -> (i32, i32) {
    %c0_i32 = arith.constant 0 : i32
    %c0_i32_0 = arith.constant 0 : i32
    %c0_i32_1 = arith.constant 0 : i32
    return %c0_i32, %c0_i32_0 : i32, i32
  }
  func.func @transform_3(%arg0: i32) -> i32 {
    %c0_i32 = arith.constant 0 : i32
    %c0_i32_0 = arith.constant 0 : i32
    return %c0_i32 : i32
  }
  func.func @transform_4(%arg0: i32) -> (i32, i32) {
    %c0_i32 = arith.constant 0 : i32
    %c0_i32_0 = arith.constant 0 : i32
    %c0_i32_1 = arith.constant 0 : i32
    return %c0_i32, %c0_i32_0 : i32, i32
  }
  func.func @transform_5(%arg0: i32) -> (i32, i32) {
    %c0_i32 = arith.constant 0 : i32
    %c0_i32_0 = arith.constant 0 : i32
    %c0_i32_1 = arith.constant 0 : i32
    return %c0_i32, %c0_i32_0 : i32, i32
  }
  func.func @transform_6(%arg0: i32) -> (i32, i32) {
    %c0_i32 = arith.constant 0 : i32
    %c0_i32_0 = arith.constant 0 : i32
    %c0_i32_1 = arith.constant 0 : i32
    return %c0_i32, %c0_i32_0 : i32, i32
  }
  func.func @transform_7(%arg0: i32) -> (i32, i32) {
    %c0_i32 = arith.constant 0 : i32
    %c0_i32_0 = arith.constant 0 : i32
    %c0_i32_1 = arith.constant 0 : i32
    return %c0_i32, %c0_i32_0 : i32, i32
  }
  func.func @transform_8(%arg0: i32) -> (i32, i32) {
    %c0_i32 = arith.constant 0 : i32
    %c0_i32_0 = arith.constant 0 : i32
    %c0_i32_1 = arith.constant 0 : i32
    return %c0_i32, %c0_i32_0 : i32, i32
  }
  func.func @transform_9(%arg0: i32) -> (i32, i32, i32) {
    %c0_i32 = arith.constant 0 : i32
    %c0_i32_0 = arith.constant 0 : i32
    %c0_i32_1 = arith.constant 0 : i32
    return %arg0, %c0_i32, %c0_i32_0 : i32, i32, i32
  }
  func.func @transform_10(%arg0: i32) -> (i32, i32, i32) {
    %c0_i32 = arith.constant 0 : i32
    %c0_i32_0 = arith.constant 0 : i32
    %c0_i32_1 = arith.constant 0 : i32
    return %arg0, %c0_i32, %c0_i32_0 : i32, i32, i32
  }
}

</mosaic_0001>

<bundles_post_ra>
// kernel: tpu_custom_call.1
= control target key start
LH: loop header
LB: loop body
LE: loop exit
PB: predicated region body
PF: predicated region fallthrough
CT: control target
= control target key end

     0   :  { %s2590_s0 = inlined_call_operand.vmem [shape: f32[8,512], index: 0, kind: input, shape index: {}]   ;;  %s2591_s1 = inlined_call_operand.vmem [shape: f32[32,8], index: 1, kind: input, shape index: {}]   ;;  %s2592_s2 = inlined_call_operand.vmem [shape: f32[32,7], index: 2, kind: input, shape index: {}]   ;;  %s2593_s3 = inlined_call_operand.vmem [shape: f32[2], index: 3, kind: input, shape index: {}]   ;;  %s2594_s4 = inlined_call_operand.vmem [shape: f32[16,32], index: 4, kind: input, shape index: {}]   ;;  %s2595_s5 = inlined_call_operand.vmem [shape: f32[16,1], index: 5, kind: input, shape index: {}]   ;;  %s2596_s6 = inlined_call_operand.vmem [shape: f32[256,4], index: 6, kind: input, shape index: {}]   ;;  %s2597_s7 = inlined_call_operand.vmem [shape: f32[2,256], index: 7, kind: input, shape index: {}]   ;;  %s2598_s8 = inlined_call_operand.vmem [shape: f32[2,256], index: 8, kind: input, shape index: {}]   ;;  %s2599_s9 = inlined_call_operand.hbm [shape: f32[4,8,128], index: 9, kind: output, shape index: {0}]   ;;  %s2600_s10 = inlined_call_operand.hbm [shape: f32[4,8,128], index: 10, kind: output, shape index: {1}]  }
   0x1   :  { %2606 = sst [smem:[#allocation13_spill]] %s2590_s0 }
   0x2   :  { %2607 = sst [smem:[#allocation14_spill]] %s2591_s1 }
   0x3   :  { %2608 = sst [smem:[#allocation15_spill]] %s2592_s2 }
   0x4   :  { %2609 = sst [smem:[#allocation16_spill]] %s2593_s3 }
   0x5   :  { %16 = vsyncpa [#allocation4], 0 }
   0x6   :  { %17 = vsyncpa [#allocation3], 0 }
   0x7   :  { %19 = vsyncpa [#allocation3 + $0x1], 0 }
   0x8   :  { %20 = vsyncpa [#allocation7], 0 }
   0x9   :  { %22 = vsyncpa [#allocation7 + $0x1], 0  ;;  %s1836_s13 = smov 0   ;;  %s1838_s14 = smov 0  }
   0xa   :  { %s1840_s15 = smov 0   ;;  %s1842_s16 = smov 0  }
   0xb LB: > { %s1857_s17 = sadd.s32 4294967295, %s1767_s16   ;;  %s1520_s18 = sadd.s32 4294967294, %s1767_s16   ;;  %s1767_s16 = sphi %s1842_s16, %s2625_s16   ;;  %s1763_s15 = sphi %s1840_s15, %s2624_s15   ;;  %s1759_s14 = sphi %s1838_s14, %s2623_s14   ;;  %s1755_s13 = sphi %s1836_s13, %s2622_s13  }
   0xc   : > { %s1861_s19 = sadd.s32 1, %s1767_s16   ;;  %s229_s20 = sadd.s32 1, %s1763_s15 }
   0xd   : > { %s226_s21 = ssub.s32 %s1767_s16, %s1861_s19  ;;  %p239_p0 = scmp.ne.s32.totalorder %s1763_s15, %s1759_s14 }
   0xe   : > { %p227_p1 = scmp.eq.s32.totalorder %s226_s21, 0  ;;  %p240_p2 = scmp.eq.s32.totalorder %s1857_s17, 1 }
   0xf   : > { %p245_p3 = scmp.ne.s32.totalorder %s1759_s14, %s1755_s13  ;;  %p246_p4 = scmp.eq.s32.totalorder %s1520_s18, 1 }
  0x10   : > { %s1872_s22 = scalar_select %p227_p1, %s1763_s15, %s229_s20  }
  0x11   : > { %p1874_p5 = por %p240_p2, %p239_p0  ;;  %p1878_p6 = por %p246_p4, %p245_p3 }
  0x12   : > { %p1521_p7 = scmp.ge.s32.totalorder %s1767_s16, 1  ;;  %p279_p8 = scmp.lt.s32.totalorder %s1767_s16, 3 }
  0x13   : > { %p1582_p9 = scmp.eq.s32.totalorder %s1857_s17, 0  ;;  %s2612_s3 = sld [smem:[#allocation16_spill]] }
  0x14   : > { %p280_p10 = pnand %p1521_p7, %p279_p8  ;;  %s1769_s28 = smov [#allocation2]  }
  0x16   : > { %p1571_p11 = pneg %p280_p10  ;;  %334 = sbr.rel (%p280_p10) target bundleno = 1285 (0x505), region = 56 }
  0x18   : > { %p1572_p12 = pnand %p1582_p9, %p1571_p11 }
  0x19   : > { %s297_s27 = sshll.u32 %s2612_s3, 4  ;;  %s298_s27 = int_to_ptr.vmem [resolvable:$true] %s297_s27 }
  0x1a   : > { %1574 = dma.vmem_to_smem (!%p1572_p12), %s298_s27, 16, %s1769_s28, [#allocation4]  }
  0x1b   : > { %1742 = dma.done.wait (%p1582_p9), [#allocation4], 16  }
  0x1c   : > { %1744 = vsyncadd (%p1582_p9), [#allocation4], 4294967280 }
  0x1d   : > { %341 = sfence }
  0x1e   : > { %s1528_s29 = sshll.u32 %s1857_s17, 1  ;;  %s2613_s2 = sld [smem:[#allocation15_spill]]  ;;  %v2601_v1 = vmov 0   ;;  %v1906_v3 = vld [vmem:[%s2596_s6 + $0x78] sm:$0xff]  ;;  %v1917_v5 = vld [vmem:[%s2596_s6 + $0x70] sm:$0xff]  ;;  %v1928_v7 = vld [vmem:[%s2596_s6 + $0x68] sm:$0xff] }
  0x1f   : > { %p380_p13 = scmp.lt.s32.totalorder %s1528_s29, 3  ;;  %1629 = vset.pattern.permute.xlu0 %v2601_v1  ;;  %1630 = vset.pattern.permute.xlu1 %v2601_v1  ;;  %v1912_v4 = vld [vmem:[%s2596_s6 + $0xf8] sm:$0xff]  ;;  %v1922_v6 = vld [vmem:[%s2596_s6 + $0xf0] sm:$0xff]  ;;  %s2614_s0 = sld [smem:[#allocation13_spill]]  ;;  %vm453_vm0 = vcmask 64512   ;;  %v1954_v13 = vld [vmem:[%s2596_s6 + $0xe8] sm:$0xff] }
  0x20   : > { %549 = vmatpush.msra.mxu2 %v1906_v3  ;;  %578 = vmatpush.msra.mxu3 %v1912_v4  ;;  %s2615_s1 = sld [smem:[#allocation14_spill]]  ;;  %v1959_v14 = vld [vmem:[%s2596_s6 + $0x60] sm:$0xff]  ;;  %v1973_v16 = vld [vmem:[%s2596_s6 + $0x58] sm:$0xff]  ;;  %v1987_v18 = vld [vmem:[%s2596_s6 + $0x50] sm:$0xff]  ;;  %vm725_vm9 = vcmask 1041408   ;;  %vm673_vm10 = vcmask 31744  }
  0x21   : > { %s2627_s29 = smov (!%p380_p13, %s1528_s29), 3  ;;  %v1968_v15 = vld [vmem:[%s2596_s6 + $0xe0] sm:$0xff]  ;;  %v1982_v17 = vld [vmem:[%s2596_s6 + $0xd8] sm:$0xff]  ;;  %v2001_v20 = vld [vmem:[%s2596_s6 + $0xd0] sm:$0xff]  ;;  %s427_s27 = sld [smem:[#allocation2]]  ;;  %vm715_vm13 = vcmask 1040384  }
  0x22   : > { %s1529_s20 = sshll.u32 %s2627_s29, 3  ;;  %550 = vmatpush.msra.mxu2 %v1917_v5  ;;  %579 = vmatpush.msra.mxu3 %v1922_v6  ;;  %v2006_v21 = vld [vmem:[%s2596_s6 + $0x48] sm:$0xff]  ;;  %v2020_v23 = vld [vmem:[%s2596_s6 + $0x40] sm:$0xff]  ;;  %v2034_v25 = vld [vmem:[%s2596_s6 + $0x38] sm:$0xff]  ;;  %vm721_vm15 = vcmask 15360   ;;  %s1777_s12 = smov 2  }
  0x23   : > { %v2015_v22 = vld [vmem:[%s2596_s6 + $0xc8] sm:$0xff]  ;;  %v2029_v24 = vld [vmem:[%s2596_s6 + $0xc0] sm:$0xff]  ;;  %v2048_v27 = vld [vmem:[%s2596_s6 + $0xb8] sm:$0xff]  ;;  %s1778_s18 = smov 126  }
  0x24   : > { %v1892_v0 = vld [vmem:[%s2613_s2] sm:$0xff]  ;;  %v1899_v2 = vld [vmem:[%s2613_s2 + $0x10] sm:$0xff]  ;;  %v1940_v9 = vld [vmem:[%s2613_s2 + $0x8] sm:$0xff]  ;;  %551 = vmatpush.msra.mxu2 %v1928_v7  ;;  %580 = vmatpush.msra.mxu3 %v1954_v13 }
  0x25   : > { %435 = vperm.xlu0 %1629, %v1892_v0   ;;  %445 = vperm.xlu1 %1630, %v1899_v2   ;;  %s383_s26 = scalar_lea.vmem %s2614_s0, %s1529_s20  ;;  %v1946_v12 = vld [vmem:[%s2613_s2 + $0x18] sm:$0xff]  ;;  %v2067_v29 = vld [vmem:[%s2596_s6 + $0x30] sm:$0xff]  ;;  %v2077_v31 = vld [vmem:[%s2596_s6 + $0x28] sm:$0xff]  ;;  %s1530_s20 = sld [smem:[#allocation2 + $0x1]] }
  0x26   : > { %v429_v8 = vld [vmem:[%s2615_s1] sm:$0xff]  ;;  %v388_v11 = vld [vmem:[%s383_s26 + $0x8] sm:$0xff]  ;;  %552 = vmatpush.msra.mxu2 %v1959_v14  ;;  %581 = vmatpush.msra.mxu3 %v1968_v15  ;;  %v431_v26 = vld [vmem:[%s2615_s1 + $0x10] sm:$0xff] }
  0x27   : > { %v387_v10 = vld [vmem:[%s383_s26] sm:$0xff]  ;;  %510 = vmatpush.msra.mxu1 %v388_v11  ;;  %v430_v19 = vld [vmem:[%s2615_s1 + $0x8] sm:$0xff]  ;;  %v432_v28 = vld [vmem:[%s2615_s1 + $0x18] sm:$0xff]  ;;  %v532_v45 = vstv %s427_s27  ;;  %s1689_s1 = scalar_lea.hbm %s2599_s9, 32 }
  0x28   : > { %481 = vmatpush.msra.mxu0 %v387_v10  ;;  %1535 = vmatmul.msk.f32.vlgmr.msra.gmra.mxu1 %vm453_vm0, %v429_v8  ;;  %v2072_v30 = vld [vmem:[%s2596_s6 + $0xb0] sm:$0xff]  ;;  %v2084_v32 = vld [vmem:[%s2596_s6 + $0xa8] sm:$0xff]  ;;  %v2091_v33 = vld [vmem:[%s2596_s6 + $0x20] sm:$0xff] }
  0x29   : > { %1531 = vmatmul.msk.f32.vlgmr.msra.gmra.mxu0 %vm453_vm0, %v429_v8  ;;  %644 = vmatpush.msrb.mxu1 %v1912_v4  ;;  %v2096_v34 = vld [vmem:[%s2596_s6 + $0xa0] sm:$0xff]  ;;  %v2105_v35 = vld [vmem:[%s2596_s6 + $0x18] sm:$0xff]  ;;  %v2123_v37 = vld [vmem:[%s2596_s6 + $0x10] sm:$0xff] }
  0x2a   : > { %615 = vmatpush.msrb.mxu0 %v1906_v3  ;;  %553 = vmatpush.msra.mxu2 %v1973_v16  ;;  %v2110_v36 = vld [vmem:[%s2596_s6 + $0x98] sm:$0xff]  ;;  %v2128_v38 = vld [vmem:[%s2596_s6 + $0x90] sm:$0xff]  ;;  %v2135_v39 = vld [vmem:[%s2596_s6 + $0x8] sm:$0xff] }
  0x2b   : > { %645 = vmatpush.msrb.mxu1 %v1922_v6  ;;  %582 = vmatpush.msra.mxu3 %v1982_v17  ;;  %v2140_v40 = vld [vmem:[%s2596_s6 + $0x88] sm:$0xff]  ;;  %v2149_v41 = vld [vmem:[%s2596_s6] sm:$0xff] }
  0x2c   : > { %616 = vmatpush.msrb.mxu0 %v1917_v5  ;;  %554 = vmatpush.msra.mxu2 %v1987_v18  ;;  %v2154_v42 = vld [vmem:[%s2596_s6 + $0x80] sm:$0xff] }
  0x2d   : > { %440 = vperm.xlu0 %1629, %v1940_v9   ;;  %450 = vperm.xlu1 %1630, %v1946_v12  }
  0x2e   : > { %617 = vmatpush.msrb.mxu0 %v1928_v7  ;;  %646 = vmatpush.msrb.mxu1 %v1954_v13 }
  0x2f   : > { %583 = vmatpush.msra.mxu3 %v2001_v20  ;;  %555 = vmatpush.msra.mxu2 %v2006_v21 }
  0x30   : > { %1536 = vmatmul.msk.f32.gmra.mxu1 %vm453_vm0, %v430_v19  ;;  %618 = vmatpush.msrb.mxu0 %v1959_v14 }
  0x31   : > { %1532 = vmatmul.msk.f32.gmra.mxu0 %vm453_vm0, %v430_v19  ;;  %647 = vmatpush.msrb.mxu1 %v1968_v15 }
  0x32   : > { %619 = vmatpush.msrb.mxu0 %v1973_v16  ;;  %584 = vmatpush.msra.mxu3 %v2015_v22 }
  0x33   : > { %648 = vmatpush.msrb.mxu1 %v1982_v17  ;;  %556 = vmatpush.msra.mxu2 %v2020_v23 }
  0x34   : > { %620 = vmatpush.msrb.mxu0 %v1987_v18  ;;  %585 = vmatpush.msra.mxu3 %v2029_v24 }
  0x35   : > { %649 = vmatpush.msrb.mxu1 %v2001_v20  ;;  %557 = vmatpush.msra.mxu2 %v2034_v25 }
  0x36   : > { %621 = vmatpush.msrb.mxu0 %v2006_v21  ;;  %586 = vmatpush.msra.mxu3 %v2048_v27 }
  0x37   : > { %650 = vmatpush.msrb.mxu1 %v2015_v22  ;;  %558 = vmatpush.msra.mxu2 %v2067_v29 }
  0x38   : > { %1537 = vmatmul.msk.f32.gmra.mxu1 %vm453_vm0, %v431_v26  ;;  %622 = vmatpush.msrb.mxu0 %v2020_v23 }
  0x39   : > { %1533 = vmatmul.msk.f32.gmra.mxu0 %vm453_vm0, %v431_v26  ;;  %651 = vmatpush.msrb.mxu1 %v2029_v24 }
  0x3a   : > { %623 = vmatpush.msrb.mxu0 %v2034_v25  ;;  %587 = vmatpush.msra.mxu3 %v2072_v30 }
  0x3b   : > { %652 = vmatpush.msrb.mxu1 %v2048_v27  ;;  %559 = vmatpush.msra.mxu2 %v2077_v31 }
  0x3c   : > { %624 = vmatpush.msrb.mxu0 %v2067_v29  ;;  %588 = vmatpush.msra.mxu3 %v2084_v32 }
  0x3d   : > { %653 = vmatpush.msrb.mxu1 %v2072_v30  ;;  %560 = vmatpush.msra.mxu2 %v2091_v33 }
  0x3e   : > { %625 = vmatpush.msrb.mxu0 %v2077_v31  ;;  %589 = vmatpush.msra.mxu3 %v2096_v34 }
  0x3f   : > { %654 = vmatpush.msrb.mxu1 %v2084_v32  ;;  %561 = vmatpush.msra.mxu2 %v2105_v35 }
  0x40   : > { %1538 = vmatmul.msk.f32.gmra.mxu1 %vm453_vm0, %v432_v28  ;;  %626 = vmatpush.msrb.mxu0 %v2091_v33 }
  0x41   : > { %1534 = vmatmul.msk.f32.gmra.mxu0 %vm453_vm0, %v432_v28  ;;  %655 = vmatpush.msrb.mxu1 %v2096_v34 }
  0x42   : > { %590 = vmatpush.msra.mxu3 %v2110_v36  ;;  %627 = vmatpush.msrb.mxu0 %v2105_v35 }
  0x43   : > { %656 = vmatpush.msrb.mxu1 %v2110_v36  ;;  %562 = vmatpush.msra.mxu2 %v2123_v37 }
  0x44   : > { %591 = vmatpush.msra.mxu3 %v2128_v38  ;;  %628 = vmatpush.msrb.mxu0 %v2123_v37 }
  0x45   : > { %657 = vmatpush.msrb.mxu1 %v2128_v38  ;;  %563 = vmatpush.msra.mxu2 %v2135_v39 }
  0x46   : > { %592 = vmatpush.msra.mxu3 %v2140_v40  ;;  %629 = vmatpush.msrb.mxu0 %v2135_v39 }
  0x47   : > { %658 = vmatpush.msrb.mxu1 %v2140_v40  ;;  %564 = vmatpush.msra.mxu2 %v2149_v41 }
  0x48   : > { %593 = vmatpush.msra.mxu3 %v2154_v42  ;;  %630 = vmatpush.msrb.mxu0 %v2149_v41 }
  0x49   : > { %659 = vmatpush.msrb.mxu1 %v2154_v42 }
  0x4a   : > { %1050 = vmatpush.msra.mxu0 %v1906_v3 }
  0x4b   : > { %1079 = vmatpush.msra.mxu1 %v1912_v4 }
  0x4c   : > { %1051 = vmatpush.msra.mxu0 %v1917_v5 }
  0x4d   : > { %1080 = vmatpush.msra.mxu1 %v1922_v6 }
  0x4e   : > { %1052 = vmatpush.msra.mxu0 %v1928_v7 }
  0x4f   : > { %1081 = vmatpush.msra.mxu1 %v1954_v13 }
  0x50   : > { %1053 = vmatpush.msra.mxu0 %v1959_v14 }
  0x51   : > { %1082 = vmatpush.msra.mxu1 %v1968_v15 }
  0x52   : > { %1054 = vmatpush.msra.mxu0 %v1973_v16 }
  0x53   : > { %1083 = vmatpush.msra.mxu1 %v1982_v17 }
  0x54   : > { %1055 = vmatpush.msra.mxu0 %v1987_v18 }
  0x55   : > { %1084 = vmatpush.msra.mxu1 %v2001_v20 }
  0x56   : > { %1056 = vmatpush.msra.mxu0 %v2006_v21 }
  0x57   : > { %1085 = vmatpush.msra.mxu1 %v2015_v22 }
  0x58   : > { %1057 = vmatpush.msra.mxu0 %v2020_v23 }
  0x59   : > { %1086 = vmatpush.msra.mxu1 %v2029_v24 }
  0x5a   : > { %1058 = vmatpush.msra.mxu0 %v2034_v25 }
  0x5b   : > { %1087 = vmatpush.msra.mxu1 %v2048_v27 }
  0x5c   : > { %1059 = vmatpush.msra.mxu0 %v2067_v29 }
  0x5d   : > { %1088 = vmatpush.msra.mxu1 %v2072_v30 }
  0x5e   : > { %1060 = vmatpush.msra.mxu0 %v2077_v31 }
  0x5f   : > { %1089 = vmatpush.msra.mxu1 %v2084_v32 }
  0x60   : > { %1061 = vmatpush.msra.mxu0 %v2091_v33 }
  0x61   : > { %1090 = vmatpush.msra.mxu1 %v2096_v34 }
  0x62   : > { %1062 = vmatpush.msra.mxu0 %v2105_v35 }
  0x63   : > { %1091 = vmatpush.msra.mxu1 %v2110_v36 }
  0x64   : > { %1063 = vmatpush.msra.mxu0 %v2123_v37 }
  0x65   : > { %1092 = vmatpush.msra.mxu1 %v2128_v38 }
  0x66   : > { %1064 = vmatpush.msra.mxu0 %v2135_v39 }
  0x67   : > { %1093 = vmatpush.msra.mxu1 %v2140_v40 }
  0x68   : > { %1065 = vmatpush.msra.mxu0 %v2149_v41 }
  0x69   : > { %1094 = vmatpush.msra.mxu1 %v2154_v42 }
  0x97   : > { %v436_v43 = vpop.permute.xlu0 %435  ;;  %v446_v62 = vpop.permute.xlu1 %445 }
  0x9f   : > { %v441_v55 = vpop.permute.xlu0 %440 }
  0xa5   : > { %v512_v46 = vpop.f32.mrf.mxu1 }
  0xa6   : > { %v483_v44 = vpop.f32.mrf.mxu0  ;;  %v513_v48 = vadd.f32 %v512_v46, %v436_v43 }
  0xa7   : > { %v484_v47 = vadd.f32 %v483_v44, %v436_v43 }
  0xa8   : > { %v534_v50 = vmul.f32 %v532_v45, %v513_v48  ;;  %vm525_vm2 = vcmp.gt.f32.partialorder %v513_v48, 0.0 }
  0xa9   : > { %v533_v49 = vmul.f32 %v532_v45, %v484_v47  ;;  %vm524_vm1 = vcmp.gt.f32.partialorder %v484_v47, 0.0 }
  0xaa   : > { %v2194_v52 = vsel %vm525_vm2, %v513_v48, %v534_v50 }
  0xab   : > { %v2192_v51 = vsel %vm524_vm1, %v484_v47, %v533_v49  ;;  %594 = vmatmul.f32.vlgmr.msra.gmra.mxu3 %v2194_v52  ;;  %v608_v54 = vmul.f32 %v2194_v52, %v2194_v52 }
  0xac   : > { %565 = vmatmul.f32.vlgmr.msra.gmra.mxu2 %v2192_v51  ;;  %v607_v53 = vmul.f32 %v2192_v51, %v2192_v51 }
  0xad   : > { %v515_v57 = vpop.f32.mrf.mxu1  ;;  %660 = vmatmul.f32.vlgmr.msrb.gmra.mxu1 %v608_v54 }
  0xae   : > { %v486_v56 = vpop.f32.mrf.mxu0  ;;  %631 = vmatmul.f32.vlgmr.msrb.gmra.mxu0 %v607_v53  ;;  %v516_v59 = vadd.f32 %v515_v57, %v441_v55  ;;  %v451_v53 = vpop.permute.xlu1 %450 }
  0xaf   : > { %v487_v58 = vadd.f32 %v486_v56, %v441_v55 }
  0xb0   : > { %v536_v61 = vmul.f32 %v532_v45, %v516_v59  ;;  %vm527_vm4 = vcmp.gt.f32.partialorder %v516_v59, 0.0 }
  0xb1   : > { %v535_v60 = vmul.f32 %v532_v45, %v487_v58  ;;  %vm526_vm3 = vcmp.gt.f32.partialorder %v487_v58, 0.0 }
  0xb2   : > { %v2206_v8 = vsel %vm527_vm4, %v516_v59, %v536_v61 }
  0xb3   : > { %v2204_v63 = vsel %vm526_vm3, %v487_v58, %v535_v60  ;;  %597 = vmatmul.f32.gmra.mxu3 %v2206_v8  ;;  %v610_v11 = vmul.f32 %v2206_v8, %v2206_v8 }
  0xb4   : > { %568 = vmatmul.f32.gmra.mxu2 %v2204_v63  ;;  %v609_v10 = vmul.f32 %v2204_v63, %v2204_v63 }
  0xb5   : > { %v518_v26 = vpop.f32.mrf.mxu1  ;;  %663 = vmatmul.f32.gmra.mxu1 %v610_v11 }
  0xb6   : > { %v489_v19 = vpop.f32.mrf.mxu0  ;;  %634 = vmatmul.f32.gmra.mxu0 %v609_v10  ;;  %v519_v43 = vadd.f32 %v518_v26, %v446_v62 }
  0xb7   : > { %v490_v28 = vadd.f32 %v489_v19, %v446_v62 }
  0xb8   : > { %v538_v46 = vmul.f32 %v532_v45, %v519_v43  ;;  %vm529_vm6 = vcmp.gt.f32.partialorder %v519_v43, 0.0 }
  0xb9   : > { %v537_v44 = vmul.f32 %v532_v45, %v490_v28  ;;  %vm528_vm5 = vcmp.gt.f32.partialorder %v490_v28, 0.0 }
  0xba   : > { %v2216_v48 = vsel %vm529_vm6, %v519_v43, %v538_v46  ;;  %v1771_v46 = vmov 2  }
  0xbb   : > { %v2214_v47 = vsel %vm528_vm5, %v490_v28, %v537_v44  ;;  %600 = vmatmul.f32.gmra.mxu3 %v2216_v48  ;;  %v612_v50 = vmul.f32 %v2216_v48, %v2216_v48  ;;  %v425_v44 = vld [vmem:[%s2597_s7] sm:$0xf]  ;;  %1634 = vset.pattern.permute.xlu1 %v1771_v46 }
  0xbc   : > { %2616 = vst [vmem:[#allocation11_spill] sm:$0xff] %v2214_v47  ;;  %571 = vmatmul.f32.gmra.mxu2 %v2214_v47  ;;  %v611_v49 = vmul.f32 %v2214_v47, %v2214_v47  ;;  %819 = vperm.xlu1 %1634, %v1940_v9  }
  0xbd   : > { %v521_v55 = vpop.f32.mrf.mxu1  ;;  %666 = vmatmul.f32.gmra.mxu1 %v612_v50  ;;  %718 = vst [vmem:[#allocation1] ss:$4 sm:$0xff] %v425_v44 }
  0xbe   : > { %v492_v54 = vpop.f32.mrf.mxu0  ;;  %637 = vmatmul.f32.gmra.mxu0 %v611_v49  ;;  %v522_v57 = vadd.f32 %v521_v55, %v451_v53  ;;  %v1772_v49 = vmov 1  }
  0xbf   : > { %v493_v56 = vadd.f32 %v492_v54, %v451_v53  ;;  %1631 = vset.pattern.permute.xlu2 %v1772_v49  ;;  %1633 = vset.pattern.permute.xlu0 %v1772_v49 }
  0xc0   : > { %v540_v59 = vmul.f32 %v532_v45, %v522_v57  ;;  %vm531_vm8 = vcmp.gt.f32.partialorder %v522_v57, 0.0  ;;  %791 = vperm.xlu2 %1631, %v1892_v0   ;;  %795 = vperm.xlu0 %1633, %v1940_v9  }
  0xc1   : > { %v539_v58 = vmul.f32 %v532_v45, %v493_v56  ;;  %vm530_vm7 = vcmp.gt.f32.partialorder %v493_v56, 0.0 }
  0xc2   : > { %v2226_v61 = vsel %vm531_vm8, %v522_v57, %v540_v59 }
  0xc3   : > { %v2224_v60 = vsel %vm530_vm7, %v493_v56, %v539_v58  ;;  %2617 = vst [vmem:[#allocation12_spill] sm:$0xff] %v2226_v61  ;;  %603 = vmatmul.f32.gmra.mxu3 %v2226_v61  ;;  %v614_v10 = vmul.f32 %v2226_v61, %v2226_v61 }
  0xc4   : > { %574 = vmatmul.f32.gmra.mxu2 %v2224_v60  ;;  %v613_v62 = vmul.f32 %v2224_v60, %v2224_v60  ;;  %v719_v57 = vld.sshfl [vmem:[#allocation1] sm:$0xff pattern:$0x73625140]  ;;  %v720_v58 = vld.sshfl [vmem:[#allocation1 + $0x8] sm:$0xff pattern:$0x73625140]  ;;  %823 = vperm.xlu1 %1634, %v1899_v2  }
  0xc5   : > { %669 = vmatmul.f32.gmra.mxu1 %v614_v10  ;;  %1539 = vmatpush.msk.msrb.mxu2 %vm725_vm9, %v719_v57  ;;  %1219 = vst [vmem:[#allocation1] ss:$4 sm:$0xff] %v425_v44 }
  0xc6   : > { %640 = vmatmul.f32.gmra.mxu0 %v613_v62  ;;  %1541 = vmatpush.msk.msrb.mxu3 %vm725_vm9, %v720_v58 }
  0xc7   : > { %1116 = vmatpush.msra.mxu2 %v1906_v3 }
  0xc8   : > { %1632 = vset.pattern.permute.xlu2 %v1771_v46  ;;  %1636 = vset.pattern.permute.xlu0 %v1771_v46 }
  0xc9   : > { %815 = vperm.xlu2 %1632, %v1892_v0   ;;  %1145 = vmatpush.msra.mxu3 %v1912_v4 }
  0xca   : > { %827 = vperm.xlu0 %1636, %v1946_v12   ;;  %1117 = vmatpush.msra.mxu2 %v1917_v5 }
  0xcb   : > { %1146 = vmatpush.msra.mxu3 %v1922_v6 }
  0xcc   : > { %1118 = vmatpush.msra.mxu2 %v1928_v7 }
  0xcd   : > { %1147 = vmatpush.msra.mxu3 %v1954_v13 }
  0xce   : > { %1119 = vmatpush.msra.mxu2 %v1959_v14 }
  0xcf   : > { %1148 = vmatpush.msra.mxu3 %v1968_v15 }
  0xd0   : > { %1120 = vmatpush.msra.mxu2 %v1973_v16 }
  0xd1   : > { %1635 = vset.pattern.permute.xlu2 %v1772_v49  ;;  %1149 = vmatpush.msra.mxu3 %v1982_v17 }
  0xd2   : > { %799 = vperm.xlu2 %1635, %v1899_v2   ;;  %1121 = vmatpush.msra.mxu2 %v1987_v18 }
  0xd3   : > { %1150 = vmatpush.msra.mxu3 %v2001_v20 }
  0xd4   : > { %1122 = vmatpush.msra.mxu2 %v2006_v21 }
  0xd5   : > { %1151 = vmatpush.msra.mxu3 %v2015_v22  ;;  %v1773_v22 = vmov 4  }
  0xd6   : > { %1123 = vmatpush.msra.mxu2 %v2020_v23  ;;  %1637 = vset.pattern.permute.xlu1 %v1773_v22 }
  0xd7   : > { %1152 = vmatpush.msra.mxu3 %v2029_v24  ;;  %1642 = vset.pattern.permute.xlu0 %v1773_v22 }
  0xd8   : > { %1124 = vmatpush.msra.mxu2 %v2034_v25  ;;  %881 = vperm.xlu1 %1637, %v1892_v0  }
  0xd9   : > { %1153 = vmatpush.msra.mxu3 %v2048_v27  ;;  %889 = vperm.xlu0 %1642, %v1899_v2   ;;  %v1774_v27 = vmov 5  }
  0xda   : > { %803 = vperm.xlu2 %1635, %v1946_v12   ;;  %1125 = vmatpush.msra.mxu2 %v2067_v29 }
  0xdb   : > { %1154 = vmatpush.msra.mxu3 %v2072_v30 }
  0xdc   : > { %1126 = vmatpush.msra.mxu2 %v2077_v31 }
  0xdd   : > { %1155 = vmatpush.msra.mxu3 %v2084_v32 }
  0xde   : > { %1127 = vmatpush.msra.mxu2 %v2091_v33  ;;  %v1775_v33 = vmov 6  }
  0xdf   : > { %1156 = vmatpush.msra.mxu3 %v2096_v34 }
  0xe0   : > { %1128 = vmatpush.msra.mxu2 %v2105_v35  ;;  %885 = vperm.xlu1 %1637, %v1940_v9  }
  0xe1   : > { %1157 = vmatpush.msra.mxu3 %v2110_v36 }
  0xe2   : > { %1638 = vset.pattern.permute.xlu2 %v1774_v27  ;;  %1129 = vmatpush.msra.mxu2 %v2123_v37 }
  0xe3   : > { %913 = vperm.xlu2 %1638, %v1892_v0   ;;  %1158 = vmatpush.msra.mxu3 %v2128_v38 }
  0xe4   : > { %1130 = vmatpush.msra.mxu2 %v2135_v39 }
  0xe5   : > { %1159 = vmatpush.msra.mxu3 %v2140_v40 }
  0xe6   : > { %1131 = vmatpush.msra.mxu2 %v2149_v41 }
  0xe7   : > { %1160 = vmatpush.msra.mxu3 %v2154_v42  ;;  %v1776_v42 = vmov 3  }
  0xe8   : > { %1644 = vset.pattern.permute.xlu1 %v1774_v27  ;;  %1643 = vset.pattern.permute.xlu0 %v1776_v42 }
  0xe9   : > { %921 = vperm.xlu1 %1644, %v1899_v2   ;;  %1002 = vperm.xlu0 %1643, %v1892_v0  }
  0xeb   : > { %1639 = vset.pattern.permute.xlu2 %v1775_v33 }
  0xec   : > { %970 = vperm.xlu2 %1639, %v1892_v0  }
  0xf1   : > { %1645 = vset.pattern.permute.xlu1 %v1773_v22  ;;  %1006 = vperm.xlu0 %1643, %v1940_v9   ;;  %v2618_v22 = vld [vmem:[#allocation11_spill] sm:$0xff] }
  0xf4   : > { %1640 = vset.pattern.permute.xlu2 %v1774_v27 }
  0xf5   : > { %917 = vperm.xlu2 %1640, %v1940_v9  }
  0xfd   : > { %1641 = vset.pattern.permute.xlu2 %v1775_v33 }
  0xfe   : > { %974 = vperm.xlu2 %1641, %v1940_v9  }
 0x106   : > { %978 = vperm.xlu2 %1641, %v1899_v2  }
 0x10e   : > { %1646 = vset.pattern.permute.xlu2 %v1774_v27 }
 0x11a   : > { %v792_v58 = vpop.permute.xlu2 %791 }
 0x12a   : > { %v661_v45 = vpop.f32.mrf.mxu1 }
 0x12b   : > { %v632_v11 = vpop.f32.mrf.mxu0 }
 0x12c   : > { %v662_v59 = vadd.f32 %v661_v45, %v632_v11 }
 0x12e   : > { %v595_v26 = vpop.f32.mrf.mxu3  ;;  %v687_v11 = vsel %vm673_vm10, %v662_v59, 0.0  ;;  %v2306_v59 = vld [vmem:[%s2598_s8] sm:$0xf] }
 0x12f   : > { %v566_v19 = vpop.f32.mrf.mxu2 }
 0x130   : > { %v596_v45 = vadd.f32 %v595_v26, %v566_v19 }
 0x132   : > { %v664_v43 = vpop.f32.mrf.mxu1  ;;  %v674_v19 = vsel %vm673_vm10, %v596_v45, 0.0 }
 0x133   : > { %v635_v28 = vpop.f32.mrf.mxu0 }
 0x134   : > { %v665_v56 = vadd.f32 %v664_v43, %v635_v28 }
 0x136   : > { %v598_v53 = vpop.f32.mrf.mxu3  ;;  %v688_v61 = vsel %vm673_vm10, %v665_v56, 0.0 }
 0x137   : > { %v569_v50 = vpop.f32.mrf.mxu2  ;;  %v689_v44 = vadd.f32 %v688_v61, %v687_v11 }
 0x138   : > { %v599_v47 = vadd.f32 %v598_v53, %v569_v50 }
 0x13a   : > { %v667_v55 = vpop.f32.mrf.mxu1  ;;  %v675_v3 = vsel %vm673_vm10, %v599_v47, 0.0 }
 0x13b   : > { %v638_v54 = vpop.f32.mrf.mxu0  ;;  %v676_v5 = vadd.f32 %v675_v3, %v674_v19  ;;  %v816_v19 = vpop.permute.xlu2 %815 }
 0x13c   : > { %v668_v62 = vadd.f32 %v667_v55, %v638_v54 }
 0x13e   : > { %v601_v1 = vpop.f32.mrf.mxu3  ;;  %v690_v28 = vsel %vm673_vm10, %v668_v62, 0.0 }
 0x13f   : > { %v572_v10 = vpop.f32.mrf.mxu2  ;;  %v691_v4 = vadd.f32 %v690_v28, %v689_v44  ;;  %v840_v44 = vperm.slane %v2306_v59, 2 }
 0x140   : > { %v602_v43 = vadd.f32 %v601_v1, %v572_v10 }
 0x142   : > { %v670_v50 = vpop.f32.mrf.mxu1  ;;  %v677_v1 = vsel %vm673_vm10, %v602_v43, 0.0  ;;  %v839_v43 = vperm.slane %v2306_v59, 0 }
 0x143   : > { %v641_v54 = vpop.f32.mrf.mxu0  ;;  %v678_v7 = vadd.f32 %v677_v1, %v676_v5 }
 0x144   : > { %v671_v46 = vadd.f32 %v670_v50, %v641_v54  ;;  %v843_v1 = vperm.slane %v839_v43, 0 }
 0x146   : > { %v692_v26 = vsel %vm673_vm10, %v671_v46, 0.0  ;;  %v604_v6 = vpop.f32.mrf.mxu3 }
 0x147   : > { %v693_v61 = vadd.f32 %v692_v26, %v691_v4  ;;  %v575_v53 = vpop.f32.mrf.mxu2  ;;  %v844_v26 = vperm.slane %v840_v44, 0 }
 0x148   : > { %v605_v47 = vadd.f32 %v604_v6, %v575_v53 }
 0x149   : > { %v694_v13 = vrot.slane %v693_v61, 4 }
 0x14a   : > { %v679_v55 = vsel %vm673_vm10, %v605_v47, 0.0 }
 0x14b   : > { %v695_v14 = vadd.f32 %v694_v13, %v693_v61  ;;  %v680_v56 = vadd.f32 %v679_v55, %v678_v7  ;;  %v796_v7 = vpop.permute.xlu0 %795 }
 0x14d   : > { %v696_v15 = vrot.slane %v695_v14, 2  ;;  %v681_v49 = vrot.slane %v680_v56, 4 }
 0x14f   : > { %v697_v16 = vadd.f32 %v696_v15, %v695_v14  ;;  %v682_v57 = vadd.f32 %v681_v49, %v680_v56  ;;  %v800_v15 = vpop.permute.xlu2 %799 }
 0x151   : > { %v683_v17 = vrot.slane %v682_v57, 2  ;;  %v698_v18 = vrot.slane %v697_v16, 1 }
 0x153   : > { %v684_v20 = vadd.f32 %v683_v17, %v682_v57  ;;  %v699_v23 = vadd.f32 %v698_v18, %v697_v16 }
 0x155   : > { %v685_v21 = vrot.slane %v684_v20, 1  ;;  %v701_v29 = vmul.f32 0.00032552084, %v699_v23 }
 0x157   : > { %v686_v24 = vadd.f32 %v685_v21, %v684_v20  ;;  %v804_v21 = vpop.permute.xlu2 %803 }
 0x159   : > { %v700_v25 = vmul.f32 0.00032552084, %v686_v24  ;;  %v828_v24 = vpop.permute.xlu0 %827 }
 0x15b   : > { %v702_v30 = vmul.f32 %v700_v25, %v700_v25 }
 0x15d   : > { %v703_v31 = vsub.f32 %v701_v29, %v702_v30 }
 0x15f   : > { %v704_v32 = vadd.f32 1e-08, %v703_v31  ;;  %v2619_v31 = vld [vmem:[#allocation12_spill] sm:$0xff]  ;;  %v914_v42 = vpop.permute.xlu2 %913 }
 0x161   : > { %1650 = vrsqrt.f32 %v704_v32  ;;  %vm711_vm12 = vweird.f32 %v704_v32 }
 0x167   : > { %v1651_v34 = vpop.eup %1650 }
 0x168   : > { %v706_v35 = vmul.f32 %v1651_v34, %v704_v32  ;;  %vm712_vm11 = vweird.f32 %v1651_v34 }
 0x169   : > { %vm713_vm14 = vmor %vm711_vm12, %vm712_vm11 }
 0x16a   : > { %v707_v36 = vmul.f32 %v1651_v34, %v706_v35 }
 0x16c   : > { %v708_v37 = vmul.f32 0.5, %v707_v36 }
 0x16e   : > { %v709_v38 = vsub.f32 1.5, %v708_v37 }
 0x170   : > { %v710_v39 = vmul.f32 %v1651_v34, %v709_v38 }
 0x172   : > { %v714_v40 = vsel %vm713_vm14, %v1651_v34, %v710_v39 }
 0x173   : > { %v716_v41 = vsel %vm715_vm13, %v700_v25, %v714_v40 }
 0x174   : > { %1540 = vmatmul.msk.f32.vlgmr.msrb.gmra.mxu2 %vm721_vm15, %v716_v41  ;;  %1542 = vmatmul.msk.f32.vlgmr.msrb.gmra.mxu3 %vm721_vm15, %v716_v41 }
 0x1f7   : > { %v747_v62 = vpop.f32.mrf.mxu2  ;;  %v767_v10 = vpop.f32.mrf.mxu3 }
 0x1f8   : > { %v770_v11 = vperm.slane %v747_v62, 0  ;;  %v2308_v45 = vperm.slane %v767_v10, 0  ;;  %v780_v28 = vperm.slane %v747_v62, 1  ;;  %v781_v50 = vperm.slane %v767_v10, 1 }
 0x1fa   : > { %v772_v0 = vsub.f32 %v2192_v51, %v770_v11  ;;  %v774_v9 = vsub.f32 %v2204_v63, %v770_v11  ;;  %v773_v54 = vsub.f32 %v2194_v52, %v2308_v45  ;;  %v775_v3 = vsub.f32 %v2206_v8, %v2308_v45  ;;  %v820_v8 = vpop.permute.xlu1 %819 }
 0x1fb   : > { %v777_v49 = vsub.f32 %v2216_v48, %v2308_v45  ;;  %v778_v16 = vsub.f32 %v2224_v60, %v770_v11  ;;  %v776_v48 = vsub.f32 %v2618_v22, %v770_v11  ;;  %v779_v32 = vsub.f32 %v2619_v31, %v2308_v45  ;;  %v2380_v11 = vpop.permute.xlu0 %889 }
 0x1fc   : > { %v782_v46 = vmul.f32 %v780_v28, %v772_v0  ;;  %v783_v4 = vmul.f32 %v781_v50, %v773_v54  ;;  %v784_v5 = vmul.f32 %v780_v28, %v774_v9  ;;  %v785_v61 = vmul.f32 %v781_v50, %v775_v3 }
 0x1fd   : > { %v787_v18 = vmul.f32 %v781_v50, %v777_v49  ;;  %v788_v20 = vmul.f32 %v780_v28, %v778_v16  ;;  %v786_v27 = vmul.f32 %v780_v28, %v776_v48  ;;  %v869_v0 = vlaneseq }
 0x1fe   : > { %v807_v53 = vmul.f32 %v792_v58, %v783_v4  ;;  %v806_v6 = vmul.f32 %v792_v58, %v782_v46  ;;  %v808_v63 = vmul.f32 %v796_v7, %v784_v5  ;;  %v809_v13 = vmul.f32 %v796_v7, %v785_v61  ;;  %v971_v58 = vpop.permute.xlu2 %970 }
 0x1ff   : > { %v812_v23 = vmul.f32 %v804_v21, %v788_v20  ;;  %v811_v60 = vmul.f32 %v800_v15, %v787_v18  ;;  %v810_v35 = vmul.f32 %v800_v15, %v786_v27  ;;  %v2386_v9 = vand.u32 127, %v869_v0 }
 0x200   : > { %v831_v47 = vadd.f32 %v816_v19, %v807_v53  ;;  %v830_v51 = vadd.f32 %v816_v19, %v806_v6  ;;  %v832_v14 = vadd.f32 %v820_v8, %v808_v63  ;;  %v833_v56 = vadd.f32 %v820_v8, %v809_v13 }
 0x201   : > { %v836_v29 = vadd.f32 %v828_v24, %v812_v23  ;;  %vm871_vm0 = vcmp.lt.s32.totalorder %v2386_v9, 2  ;;  %vm960_vm1 = vcmp.lt.s32.totalorder %v2386_v9, 126 }
 0x202   : > { %v2318_v55 = vmul.f32 %v844_v26, %v831_v47  ;;  %v2320_v52 = vmul.f32 %v843_v1, %v830_v51  ;;  %v2331_v57 = vmul.f32 %v843_v1, %v832_v14  ;;  %v2333_v17 = vmul.f32 %v844_v26, %v833_v56  ;;  %v824_v25 = vpop.permute.xlu1 %823 }
 0x203   : > { %v835_v30 = vadd.f32 %v824_v25, %v811_v60  ;;  %v2348_v34 = vmul.f32 %v843_v1, %v836_v29  ;;  %v834_v37 = vadd.f32 %v824_v25, %v810_v35  ;;  %v2400_v56 = vstv %s1530_s20 }
 0x204   : > { %861 = vrot.lane.b32.xlu2 %v2318_v55, %s1777_s12  ;;  %944 = vrot.lane.b32.xlu0 %v2320_v52, %s1778_s18  ;;  %v929_v5 = vmul.f32 %v914_v42, %v2318_v55  ;;  %v928_v61 = vmul.f32 %v914_v42, %v2320_v52 }
 0x205   : > { %853 = vrot.lane.b32.xlu1 %v2320_v52, %s1777_s12  ;;  %v2350_v36 = vmul.f32 %v844_v26, %v835_v30  ;;  %v2358_v39 = vmul.f32 %v843_v1, %v834_v37 }
 0x206   : > { %v918_v10 = vpop.permute.xlu2 %917 }
 0x207   : > { %v930_v30 = vmul.f32 %v918_v10, %v2331_v57  ;;  %v931_v31 = vmul.f32 %v918_v10, %v2333_v17 }
 0x20a   : > { %v882_v62 = vpop.permute.xlu1 %881 }
 0x20c   : > { %863 = vrot.lane.b32.xlu2 %v2333_v17, %s1777_s12  ;;  %946 = vrot.lane.b32.xlu0 %v2331_v57, %s1778_s18 }
 0x20d   : > { %952 = vrot.lane.b32.xlu1 %v2318_v55, %s1778_s18 }
 0x20e   : > { %v975_v28 = vpop.permute.xlu2 %974 }
 0x212   : > { %v886_v45 = vpop.permute.xlu1 %885 }
 0x214   : > { %925 = vperm.xlu2 %1646, %v1946_v12   ;;  %1010 = vperm.xlu0 %1643, %v1899_v2   ;;  %v789_v2 = vmul.f32 %v781_v50, %v779_v32 }
 0x215   : > { %855 = vrot.lane.b32.xlu1 %v2331_v57, %s1777_s12 }
 0x216   : > { %v813_v38 = vmul.f32 %v804_v21, %v789_v2  ;;  %v2384_v44 = vpop.permute.xlu2 %978 }
 0x218   : > { %v837_v40 = vadd.f32 %v828_v24, %v813_v38 }
 0x21a   : > { %v2365_v41 = vmul.f32 %v844_v26, %v837_v40  ;;  %v2382_v43 = vpop.permute.xlu1 %921 }
 0x21c   : > { %865 = vrot.lane.b32.xlu2 %v2350_v36, %s1777_s12  ;;  %950 = vrot.lane.b32.xlu0 %v2348_v34, %s1778_s18 }
 0x21d   : > { %893 = vperm.xlu1 %1645, %v1946_v12   ;;  %1647 = vset.pattern.permute.xlu2 %v1775_v33  ;;  %v2620_v33 = vmov 0  }
 0x224   : > { %948 = vrot.lane.b32.xlu2 %v2358_v39, %s1778_s18  ;;  %1014 = vperm.xlu0 %1643, %v1946_v12  }
 0x225   : > { %954 = vrot.lane.b32.xlu1 %v2333_v17, %s1778_s18 }
 0x22c   : > { %867 = vrot.lane.b32.xlu2 %v2365_v41, %s1777_s12  ;;  %1649 = vset.pattern.permute.xlu0 %v2620_v33 }
 0x22d   : > { %857 = vrot.lane.b32.xlu1 %v2358_v39, %s1777_s12 }
 0x234   : > { %982 = vperm.xlu2 %1647, %v1946_v12   ;;  %v1003_v12 = vpop.permute.xlu0 %1002 }
 0x235   : > { %956 = vrot.lane.b32.xlu1 %v2350_v36, %s1778_s18 }
 0x23c   : > { %1648 = vset.pattern.permute.xlu2 %v2620_v33  ;;  %v1007_v54 = vpop.permute.xlu0 %1006 }
 0x23d   : > { %859 = vrot.lane.b32.xlu1 %v2348_v34, %s1777_s12  ;;  %s2531_s12 = sand.u32 1, %s1759_s14  }
 0x23e   : > { %s2605_s20 = sshll.u32 %s2531_s12, 4  ;;  %s1376_s21 = scalar_lea.sflag [#allocation3], %s2531_s12 }
 0x23f   : > { %s371_s27 = scalar_lea.vmem [#allocation5], %s2605_s20 }
 0x240   : > { %s1393_s28 = sshll.u32 %s371_s27, 4  ;;  %s1394_s28 = int_to_ptr.vmem [resolvable:$true] %s1393_s28 }
 0x245   : > { %958 = vrot.lane.b32.xlu1 %v2365_v41, %s1778_s18 }
 0x25e   : > { %v862_v3 = vpop.permute.xlu2 %861 }
 0x266   : > { %v864_v55 = vpop.permute.xlu2 %863 }
 0x26e   : > { %v2416_v60 = vpop.permute.xlu2 %925 }
 0x276   : > { %v945_v26 = vpop.permute.xlu0 %944 }
 0x277   : > { %v854_v50 = vpop.permute.xlu1 %853 }
 0x278   : > { %v872_v46 = vsel %vm871_vm0, %v854_v50, %v862_v3  ;;  %v876_v4 = vsel %vm871_vm0, %v862_v3, %v854_v50 }
 0x279   : > { %v896_v19 = vmul.f32 %v882_v62, %v876_v4  ;;  %v897_v1 = vmul.f32 %v882_v62, %v872_v46 }
 0x27b   : > { %v936_v51 = vadd.f32 %v928_v61, %v896_v19  ;;  %v937_v7 = vadd.f32 %v929_v5, %v897_v1  ;;  %v932_v5 = vmul.f32 %v2382_v43, %v2358_v39  ;;  %v933_v61 = vmul.f32 %v2382_v43, %v2350_v36 }
 0x27e   : > { %v947_v32 = vpop.permute.xlu0 %946 }
 0x27f   : > { %v953_v53 = vpop.permute.xlu1 %952 }
 0x280   : > { %v961_v6 = vsel %vm960_vm1, %v945_v26, %v953_v53  ;;  %v965_v47 = vsel %vm960_vm1, %v953_v53, %v945_v26 }
 0x281   : > { %v985_v63 = vmul.f32 %v971_v58, %v961_v6  ;;  %v986_v13 = vmul.f32 %v971_v58, %v965_v47  ;;  %v866_v58 = vpop.permute.xlu2 %865 }
 0x283   : > { %v993_v8 = vadd.f32 %v985_v63, %v936_v51  ;;  %v994_v14 = vadd.f32 %v986_v13, %v937_v7 }
 0x285   : > { %v1017_v15 = vadd.f32 %v1003_v12, %v993_v8  ;;  %v1018_v49 = vadd.f32 %v1003_v12, %v994_v14 }
 0x286   : > { %v1011_v6 = vpop.permute.xlu0 %1010 }
 0x287   : > { %v856_v16 = vpop.permute.xlu1 %855  ;;  %vm1025_vm2 = vcmp.gt.f32.partialorder %v1017_v15, 0.0  ;;  %v1034_v52 = vmul.f32 %v2400_v56, %v1017_v15  ;;  %vm1026_vm3 = vcmp.gt.f32.partialorder %v1018_v49, 0.0  ;;  %v1035_v18 = vmul.f32 %v2400_v56, %v1018_v49 }
 0x288   : > { %v873_v24 = vsel %vm871_vm0, %v856_v16, %v864_v55  ;;  %v877_v25 = vsel %vm871_vm0, %v864_v55, %v856_v16 }
 0x289   : > { %v2404_v20 = vsel %vm1025_vm2, %v1017_v15, %v1034_v52  ;;  %v2406_v21 = vsel %vm1026_vm3, %v1018_v49, %v1035_v18  ;;  %v898_v27 = vmul.f32 %v886_v45, %v877_v25  ;;  %v899_v29 = vmul.f32 %v886_v45, %v873_v24  ;;  %v949_v19 = vpop.permute.xlu2 %948 }
 0x28a   : > { %1066 = vmatmul.f32.vlgmr.msra.gmra.mxu0 %v2404_v20  ;;  %v1108_v22 = vmul.f32 %v2404_v20, %v2404_v20  ;;  %1095 = vmatmul.f32.vlgmr.msra.gmra.mxu1 %v2406_v21  ;;  %v1109_v48 = vmul.f32 %v2406_v21, %v2406_v21 }
 0x28b   : > { %v938_v38 = vadd.f32 %v930_v30, %v898_v27  ;;  %v939_v40 = vadd.f32 %v931_v31, %v899_v29  ;;  %v934_v30 = vmul.f32 %v2416_v60, %v2348_v34  ;;  %v935_v31 = vmul.f32 %v2416_v60, %v2365_v41 }
 0x28c   : > { %1132 = vmatmul.f32.vlgmr.msra.gmra.mxu2 %v1108_v22  ;;  %1161 = vmatmul.f32.vlgmr.msra.gmra.mxu3 %v1109_v48 }
 0x28f   : > { %v2414_v23 = vpop.permute.xlu1 %893 }
 0x291   : > { %v868_v49 = vpop.permute.xlu2 %867 }
 0x297   : > { %v955_v35 = vpop.permute.xlu1 %954 }
 0x298   : > { %v962_v2 = vsel %vm960_vm1, %v947_v32, %v955_v35  ;;  %v966_v37 = vsel %vm960_vm1, %v955_v35, %v947_v32 }
 0x299   : > { %v987_v33 = vmul.f32 %v975_v28, %v962_v2  ;;  %v988_v42 = vmul.f32 %v975_v28, %v966_v37  ;;  %v983_v29 = vpop.permute.xlu2 %982 }
 0x29b   : > { %v995_v62 = vadd.f32 %v987_v33, %v938_v38  ;;  %v996_v12 = vadd.f32 %v988_v42, %v939_v40 }
 0x29d   : > { %v1019_v45 = vadd.f32 %v1007_v54, %v995_v62  ;;  %v1020_v0 = vadd.f32 %v1007_v54, %v996_v12 }
 0x29f   : > { %v858_v57 = vpop.permute.xlu1 %857  ;;  %vm1027_vm4 = vcmp.gt.f32.partialorder %v1019_v45, 0.0  ;;  %v1036_v17 = vmul.f32 %v2400_v56, %v1019_v45  ;;  %vm1028_vm5 = vcmp.gt.f32.partialorder %v1020_v0, 0.0  ;;  %v1037_v10 = vmul.f32 %v2400_v56, %v1020_v0 }
 0x2a0   : > { %v874_v50 = vsel %vm871_vm0, %v858_v57, %v866_v58  ;;  %v878_v28 = vsel %vm871_vm0, %v866_v58, %v858_v57 }
 0x2a1   : > { %v2432_v3 = vsel %vm1027_vm4, %v1019_v45, %v1036_v17  ;;  %v2434_v46 = vsel %vm1028_vm5, %v1020_v0, %v1037_v10  ;;  %v900_v1 = vmul.f32 %v2380_v11, %v878_v28  ;;  %v901_v26 = vmul.f32 %v2380_v11, %v874_v50 }
 0x2a2   : > { %1069 = vmatmul.f32.gmra.mxu0 %v2432_v3  ;;  %1098 = vmatmul.f32.gmra.mxu1 %v2434_v46  ;;  %v1110_v54 = vmul.f32 %v2432_v3, %v2432_v3  ;;  %v1111_v4 = vmul.f32 %v2434_v46, %v2434_v46 }
 0x2a3   : > { %v940_v7 = vadd.f32 %v932_v5, %v900_v1  ;;  %v941_v63 = vadd.f32 %v933_v61, %v901_v26 }
 0x2a4   : > { %1135 = vmatmul.f32.gmra.mxu2 %v1110_v54  ;;  %1164 = vmatmul.f32.gmra.mxu3 %v1111_v4 }
 0x2a7   : > { %v957_v53 = vpop.permute.xlu1 %956 }
 0x2a8   : > { %v963_v47 = vsel %vm960_vm1, %v949_v19, %v957_v53  ;;  %v967_v51 = vsel %vm960_vm1, %v957_v53, %v949_v19 }
 0x2a9   : > { %v989_v13 = vmul.f32 %v2384_v44, %v963_v47  ;;  %v990_v11 = vmul.f32 %v2384_v44, %v967_v51  ;;  %v951_v44 = vpop.permute.xlu0 %950 }
 0x2ab   : > { %v997_v8 = vadd.f32 %v989_v13, %v940_v7  ;;  %v998_v14 = vadd.f32 %v990_v11, %v941_v63 }
 0x2ad   : > { %v1021_v39 = vadd.f32 %v1011_v6, %v997_v8  ;;  %v1022_v15 = vadd.f32 %v1011_v6, %v998_v14 }
 0x2af   : > { %v860_v36 = vpop.permute.xlu1 %859  ;;  %vm1029_vm6 = vcmp.gt.f32.partialorder %v1021_v39, 0.0  ;;  %v1038_v43 = vmul.f32 %v2400_v56, %v1021_v39  ;;  %vm1030_vm7 = vcmp.gt.f32.partialorder %v1022_v15, 0.0  ;;  %v1039_v55 = vmul.f32 %v2400_v56, %v1022_v15 }
 0x2b0   : > { %v875_v16 = vsel %vm871_vm0, %v860_v36, %v868_v49  ;;  %v879_v22 = vsel %vm871_vm0, %v868_v49, %v860_v36 }
 0x2b1   : > { %v2460_v52 = vsel %vm1029_vm6, %v1021_v39, %v1038_v43  ;;  %v2462_v18 = vsel %vm1030_vm7, %v1022_v15, %v1039_v55  ;;  %v902_v25 = vmul.f32 %v2414_v23, %v879_v22  ;;  %v903_v27 = vmul.f32 %v2414_v23, %v875_v16  ;;  %v1015_v58 = vpop.permute.xlu0 %1014 }
 0x2b2   : > { %1072 = vmatmul.f32.gmra.mxu0 %v2460_v52  ;;  %1101 = vmatmul.f32.gmra.mxu1 %v2462_v18  ;;  %v1112_v48 = vmul.f32 %v2460_v52, %v2460_v52  ;;  %v1113_v24 = vmul.f32 %v2462_v18, %v2462_v18 }
 0x2b3   : > { %v942_v37 = vadd.f32 %v934_v30, %v902_v25  ;;  %v943_v38 = vadd.f32 %v935_v31, %v903_v27 }
 0x2b4   : > { %1138 = vmatmul.f32.gmra.mxu2 %v1112_v48  ;;  %1167 = vmatmul.f32.gmra.mxu3 %v1113_v24 }
 0x2b7   : > { %v959_v32 = vpop.permute.xlu1 %958 }
 0x2b8   : > { %v964_v35 = vsel %vm960_vm1, %v951_v44, %v959_v32  ;;  %v968_v2 = vsel %vm960_vm1, %v959_v32, %v951_v44 }
 0x2b9   : > { %v991_v40 = vmul.f32 %v983_v29, %v964_v35  ;;  %v992_v33 = vmul.f32 %v983_v29, %v968_v2 }
 0x2bb   : > { %v999_v42 = vadd.f32 %v991_v40, %v942_v37  ;;  %v1000_v23 = vadd.f32 %v992_v33, %v943_v38 }
 0x2bd   : > { %v1023_v62 = vadd.f32 %v1015_v58, %v999_v42  ;;  %v1024_v12 = vadd.f32 %v1015_v58, %v1000_v23  ;;  %v1220_v23 = vld.sshfl [vmem:[#allocation1] sm:$0xff pattern:$0x73625140]  ;;  %v1221_v58 = vld.sshfl [vmem:[#allocation1 + $0x8] sm:$0xff pattern:$0x73625140] }
 0x2be   : > { %1543 = vmatpush.msk.msrb.mxu0 %vm725_vm9, %v1220_v23  ;;  %1545 = vmatpush.msk.msrb.mxu1 %vm725_vm9, %v1221_v58  ;;  %vm1316_vm9 = vcmask 261120  }
 0x2bf   : > { %vm1031_vm8 = vcmp.gt.f32.partialorder %v1023_v62, 0.0  ;;  %v1040_v34 = vmul.f32 %v2400_v56, %v1023_v62  ;;  %vm1032_vm11 = vcmp.gt.f32.partialorder %v1024_v12, 0.0  ;;  %v1041_v41 = vmul.f32 %v2400_v56, %v1024_v12 }
 0x2c1   : > { %v2484_v60 = vsel %vm1031_vm8, %v1023_v62, %v1040_v34  ;;  %v2486_v45 = vsel %vm1032_vm11, %v1024_v12, %v1041_v41 }
 0x2c2   : > { %1075 = vmatmul.f32.gmra.mxu0 %v2484_v60  ;;  %1104 = vmatmul.f32.gmra.mxu1 %v2486_v45  ;;  %v1114_v9 = vmul.f32 %v2484_v60, %v2484_v60  ;;  %v1115_v0 = vmul.f32 %v2486_v45, %v2486_v45 }
 0x2c4   : > { %1141 = vmatmul.f32.gmra.mxu2 %v1114_v9  ;;  %1170 = vmatmul.f32.gmra.mxu3 %v1115_v0 }
 0x307   : > { %v1067_v57 = vpop.f32.mrf.mxu0  ;;  %v1096_v17 = vpop.f32.mrf.mxu1 }
 0x308   : > { %v1097_v5 = vadd.f32 %v1096_v17, %v1067_v57 }
 0x30a   : > { %v1174_v6 = vsel %vm673_vm10, %v1097_v5, 0.0  ;;  %v1305_v5 = vld [vmem:[%s2595_s5 + $0x8] sm:$0xff] }
 0x30b   : > { %1313 = vperm.xlu0 %1649, %v1305_v5  }
 0x30f   : > { %v1133_v10 = vpop.f32.mrf.mxu2  ;;  %v1162_v56 = vpop.f32.mrf.mxu3 }
 0x310   : > { %v1163_v15 = vadd.f32 %v1162_v56, %v1133_v10 }
 0x312   : > { %v1187_v44 = vsel %vm673_vm10, %v1163_v15, 0.0 }
 0x31f   : > { %v1070_v50 = vpop.f32.mrf.mxu0  ;;  %v1099_v28 = vpop.f32.mrf.mxu1 }
 0x320   : > { %v1100_v26 = vadd.f32 %v1099_v28, %v1070_v50 }
 0x322   : > { %v1175_v53 = vsel %vm673_vm10, %v1100_v26, 0.0 }
 0x323   : > { %v1176_v63 = vadd.f32 %v1175_v53, %v1174_v6  ;;  %v1288_v53 = vperm.slane %v2306_v59, 1  ;;  %v1289_v6 = vperm.slane %v2306_v59, 3 }
 0x327   : > { %v1136_v54 = vpop.f32.mrf.mxu2  ;;  %v1165_v4 = vpop.f32.mrf.mxu3 }
 0x328   : > { %v1166_v8 = vadd.f32 %v1165_v4, %v1136_v54 }
 0x32a   : > { %v1188_v55 = vsel %vm673_vm10, %v1166_v8, 0.0  ;;  %v1292_v8 = vperm.slane %v1288_v53, 1 }
 0x32b   : > { %v1189_v48 = vadd.f32 %v1188_v55, %v1187_v44 }
 0x32f   : > { %v1073_v19 = vpop.f32.mrf.mxu0  ;;  %v1102_v1 = vpop.f32.mrf.mxu1 }
 0x330   : > { %v1103_v61 = vadd.f32 %v1102_v1, %v1073_v19 }
 0x332   : > { %v1177_v47 = vsel %vm673_vm10, %v1103_v61, 0.0  ;;  %v1304_v61 = vld [vmem:[%s2595_s5] sm:$0xff] }
 0x333   : > { %v1178_v39 = vadd.f32 %v1177_v47, %v1176_v63  ;;  %1308 = vperm.xlu2 %1648, %v1304_v61  }
 0x337   : > { %v1139_v51 = vpop.f32.mrf.mxu2  ;;  %v1168_v7 = vpop.f32.mrf.mxu3 }
 0x338   : > { %v1169_v49 = vadd.f32 %v1168_v7, %v1139_v51 }
 0x33a   : > { %v1190_v22 = vsel %vm673_vm10, %v1169_v49, 0.0 }
 0x33b   : > { %v1191_v30 = vadd.f32 %v1190_v22, %v1189_v48 }
 0x33f   : > { %v1076_v13 = vpop.f32.mrf.mxu0  ;;  %v1105_v11 = vpop.f32.mrf.mxu1 }
 0x340   : > { %v1106_v14 = vadd.f32 %v1105_v11, %v1076_v13 }
 0x342   : > { %v1179_v36 = vsel %vm673_vm10, %v1106_v14, 0.0  ;;  %v1293_v14 = vperm.slane %v1289_v6, 1 }
 0x343   : > { %v1180_v43 = vadd.f32 %v1179_v36, %v1178_v39 }
 0x345   : > { %v1181_v16 = vrot.slane %v1180_v43, 4 }
 0x347   : > { %v1182_v24 = vadd.f32 %v1181_v16, %v1180_v43  ;;  %v1142_v25 = vpop.f32.mrf.mxu2  ;;  %v1171_v27 = vpop.f32.mrf.mxu3 }
 0x348   : > { %v1172_v29 = vadd.f32 %v1171_v27, %v1142_v25 }
 0x349   : > { %v1183_v31 = vrot.slane %v1182_v24, 2 }
 0x34a   : > { %v1192_v32 = vsel %vm673_vm10, %v1172_v29, 0.0 }
 0x34b   : > { %v1184_v35 = vadd.f32 %v1183_v31, %v1182_v24  ;;  %v1193_v2 = vadd.f32 %v1192_v32, %v1191_v30  ;;  %v1302_v31 = vld [vmem:[%s2594_s4] sm:$0xff]  ;;  %v1303_v32 = vld [vmem:[%s2594_s4 + $0x8] sm:$0xff] }
 0x34d   : > { %v1194_v37 = vrot.slane %v1193_v2, 4  ;;  %v1185_v38 = vrot.slane %v1184_v35, 1 }
 0x34f   : > { %v1195_v40 = vadd.f32 %v1194_v37, %v1193_v2  ;;  %v1186_v42 = vadd.f32 %v1185_v38, %v1184_v35 }
 0x351   : > { %v1196_v33 = vrot.slane %v1195_v40, 2  ;;  %v1200_v34 = vmul.f32 0.00032552084, %v1186_v42 }
 0x353   : > { %v1197_v62 = vadd.f32 %v1196_v33, %v1195_v40  ;;  %v1202_v0 = vmul.f32 %v1200_v34, %v1200_v34 }
 0x355   : > { %v1198_v12 = vrot.slane %v1197_v62, 1 }
 0x357   : > { %v1199_v41 = vadd.f32 %v1198_v12, %v1197_v62 }
 0x359   : > { %v1201_v9 = vmul.f32 0.00032552084, %v1199_v41 }
 0x35b   : > { %v1203_v57 = vsub.f32 %v1201_v9, %v1202_v0 }
 0x35d   : > { %v1204_v17 = vadd.f32 1e-08, %v1203_v57 }
 0x35f   : > { %1652 = vrsqrt.f32 %v1204_v17  ;;  %vm1211_vm12 = vweird.f32 %v1204_v17 }
 0x365   : > { %v1653_v10 = vpop.eup %1652 }
 0x366   : > { %v1206_v56 = vmul.f32 %v1653_v10, %v1204_v17  ;;  %vm1212_vm10 = vweird.f32 %v1653_v10 }
 0x367   : > { %vm1213_vm14 = vmor %vm1211_vm12, %vm1212_vm10 }
 0x368   : > { %v1207_v50 = vmul.f32 %v1653_v10, %v1206_v56 }
 0x36a   : > { %v1208_v28 = vmul.f32 0.5, %v1207_v50 }
 0x36c   : > { %v1209_v54 = vsub.f32 1.5, %v1208_v28 }
 0x36e   : > { %v1210_v4 = vmul.f32 %v1653_v10, %v1209_v54 }
 0x370   : > { %v1214_v19 = vsel %vm1213_vm14, %v1653_v10, %v1210_v4 }
 0x371   : > { %v1215_v1 = vsel %vm715_vm13, %v1200_v34, %v1214_v19 }
 0x372   : > { %1217 = vrot.lane.b32.xlu1 %v1215_v1, %s1778_s18  ;;  %s1561_s18 = sshll.u32 %s1857_s17, 4 }
 0x373   : > { %s1392_s26 = scalar_lea.hbm %s2599_s9, %s1561_s18  ;;  %s1409_s29 = scalar_lea.hbm %s2600_s10, %s1561_s18 }
 0x374   : > { %s1395_s30 = sshll.u32 %s1392_s26, 4  ;;  %s1396_s30 = int_to_ptr.hbm [resolvable:$true] %s1395_s30 }
 0x375   : > { %s1683_s25 = sshra.s32 %s1396_s30, 4  ;;  %s1684_s25 = int_to_ptr.hbm [resolvable:$true] %s1683_s25 }
 0x376   : > { %s1685_s0 = scalar_lea.hbm %s1684_s25, 16  ;;  %p1690_p3 = scmp.lt.s32.totalorder %s1684_s25, %s2599_s9 }
 0x377   : > { %p1686_p0 = scmp.ne.s32.totalorder %s1684_s25, %s1685_s0  ;;  %p1691_p4 = scmp.lt.s32.totalorder %s1689_s1, %s1685_s0 }
 0x379   : > { %p1687_p1 = pnand %p1686_p0, %p1874_p5  ;;  %p1692_p7 = por %p1691_p4, %p1690_p3 }
 0x37b   : > { %p1688_p2 = pneg %p1687_p1 }
 0x37d   : > { %p1693_p8 = pnand %p1692_p7, %p1688_p2 }
 0x38d   : > { %v1309_v35 = vpop.permute.xlu2 %1308 }
 0x3e4   : > { %v1218_v26 = vpop.permute.xlu1 %1217 }
 0x3e5   : > { %1544 = vmatmul.msk.f32.vlgmr.msrb.gmra.mxu0 %vm721_vm15, %v1218_v26  ;;  %1546 = vmatmul.msk.f32.vlgmr.msrb.gmra.mxu1 %vm721_vm15, %v1218_v26 }
 0x462   : > { %v1245_v47 = vpop.f32.mrf.mxu0  ;;  %v1265_v51 = vpop.f32.mrf.mxu1 }
 0x463   : > { %v1268_v7 = vperm.slane %v1245_v47, 0  ;;  %v1269_v63 = vperm.slane %v1265_v51, 0  ;;  %v1278_v13 = vperm.slane %v1245_v47, 1  ;;  %v1279_v11 = vperm.slane %v1265_v51, 1 }
 0x465   : > { %v1276_v39 = vsub.f32 %v2484_v60, %v1268_v7  ;;  %v1277_v15 = vsub.f32 %v2486_v45, %v1269_v63  ;;  %v1274_v49 = vsub.f32 %v2460_v52, %v1268_v7  ;;  %v1275_v36 = vsub.f32 %v2462_v18, %v1269_v63 }
 0x466   : > { %v1272_v43 = vsub.f32 %v2432_v3, %v1268_v7  ;;  %v1273_v59 = vsub.f32 %v2434_v46, %v1269_v63  ;;  %v1270_v55 = vsub.f32 %v2404_v20, %v1268_v7  ;;  %v1271_v16 = vsub.f32 %v2406_v21, %v1269_v63 }
 0x467   : > { %v1286_v44 = vmul.f32 %v1278_v13, %v1276_v39  ;;  %v1287_v22 = vmul.f32 %v1279_v11, %v1277_v15  ;;  %v1284_v48 = vmul.f32 %v1278_v13, %v1274_v49  ;;  %v1285_v24 = vmul.f32 %v1279_v11, %v1275_v36 }
 0x468   : > { %v1282_v27 = vmul.f32 %v1278_v13, %v1272_v43  ;;  %v1283_v45 = vmul.f32 %v1279_v11, %v1273_v59  ;;  %v1280_v29 = vmul.f32 %v1278_v13, %v1270_v55  ;;  %v1281_v3 = vmul.f32 %v1279_v11, %v1271_v16 }
 0x469   : > { %v1300_v25 = vmul.f32 %v1292_v8, %v1286_v44  ;;  %v1301_v60 = vmul.f32 %v1293_v14, %v1287_v22  ;;  %v1298_v52 = vmul.f32 %v1292_v8, %v1284_v48  ;;  %v1299_v18 = vmul.f32 %v1293_v14, %v1285_v24 }
 0x46a   : > { %v1296_v20 = vmul.f32 %v1292_v8, %v1282_v27  ;;  %v1297_v21 = vmul.f32 %v1293_v14, %v1283_v45  ;;  %v1294_v46 = vmul.f32 %v1292_v8, %v1280_v29  ;;  %v1295_v30 = vmul.f32 %v1293_v14, %v1281_v3 }
 0x46b   : > { %1335 = vmatpush.msra.mxu0 %v1300_v25  ;;  %1358 = vmatpush.msra.mxu1 %v1301_v60 }
 0x46d   : > { %1336 = vmatpush.msra.mxu0 %v1298_v52  ;;  %1359 = vmatpush.msra.mxu1 %v1299_v18 }
 0x46f   : > { %1337 = vmatpush.msra.mxu0 %v1296_v20  ;;  %1360 = vmatpush.msra.mxu1 %v1297_v21 }
 0x471   : > { %1338 = vmatpush.msra.mxu0 %v1294_v46  ;;  %1361 = vmatpush.msra.mxu1 %v1295_v30 }
 0x472   : > { %1547 = vmatmul.msk.f32.vlgmr.msra.gmra.mxu0 %vm1316_vm9, %v1302_v31  ;;  %1549 = vmatmul.msk.f32.vlgmr.msra.gmra.mxu1 %vm1316_vm9, %v1302_v31 }
 0x47a   : > { %1548 = vmatmul.msk.f32.gmra.mxu0 %vm1316_vm9, %v1303_v32  ;;  %1550 = vmatmul.msk.f32.gmra.mxu1 %vm1316_vm9, %v1303_v32 }
 0x4ef   : > { %v1340_v2 = vpop.f32.mrf.mxu0  ;;  %v1363_v37 = vpop.f32.mrf.mxu1 }
 0x4f0   : > { %v1341_v38 = vadd.f32 %v1340_v2, %v1309_v35  ;;  %v1364_v40 = vadd.f32 %v1363_v37, %v1309_v35 }
 0x4f2   : > { %1369 = vst [vmem:[%s371_s27] sm:$0xff] %v1341_v38 }
 0x4f3   : > { %1551 = vst [vmem:[%s371_s27 + $0x8] sm:$0xff] %v1364_v40 }
 0x4f4   : > { %1696 = shalt.err (!%p1693_p8)
}
 0x4f5   : > { %s1779_s18 = smov 128   ;;  %s1780_s27 = smov 8   ;;  %v1314_v33 = vpop.permute.xlu0 %1313 }
 0x4f6   : > { %1567 = dma.vmem_to_hbm [thread:$0]  (%p1874_p5), %s1394_s28, 256, %s1396_s30, %s1376_s21, %s1779_s18, %s1779_s18, %s1780_s27  }
 0x4f7   : > { %s2621_s20 = sshll.u32 %s2531_s12, 4  ;;  %s1412_s3 = sshll.u32 %s1409_s29, 4  ;;  %v1343_v42 = vpop.f32.mrf.mxu0  ;;  %v1366_v23 = vpop.f32.mrf.mxu1  ;;  %s1413_s3 = int_to_ptr.hbm [resolvable:$true] %s1412_s3 }
 0x4f8   : > { %s378_s17 = scalar_lea.vmem [#allocation6], %s2621_s20  ;;  %v1344_v58 = vadd.f32 %v1343_v42, %v1314_v33  ;;  %v1367_v62 = vadd.f32 %v1366_v23, %v1314_v33  ;;  %s1381_s0 = scalar_lea.sflag [#allocation7], %s2531_s12 }
 0x4f9   : > { %s1410_s2 = sshll.u32 %s378_s17, 4  ;;  %s1711_s1 = sshra.s32 %s1413_s3, 4  ;;  %s1411_s2 = int_to_ptr.vmem [resolvable:$true] %s1410_s2  ;;  %s1712_s1 = int_to_ptr.hbm [resolvable:$true] %s1711_s1 }
 0x4fa   : > { %1370 = vst [vmem:[%s378_s17] sm:$0xff] %v1344_v58  ;;  %s1713_s11 = scalar_lea.hbm %s1712_s1, 16  ;;  %s1717_s29 = scalar_lea.hbm %s2600_s10, 32 }
 0x4fb   : > { %1552 = vst [vmem:[%s378_s17 + $0x8] sm:$0xff] %v1367_v62  ;;  %p1714_p9 = scmp.ne.s32.totalorder %s1712_s1, %s1713_s11  ;;  %p1718_p12 = scmp.lt.s32.totalorder %s1712_s1, %s2600_s10 }
 0x4fc   : > { %p1719_p13 = scmp.lt.s32.totalorder %s1717_s29, %s1713_s11 }
 0x4fd   : > { %p1715_p10 = pnand %p1714_p9, %p1874_p5 }
 0x4fe   : > { %p1720_p0 = por %p1719_p13, %p1718_p12 }
 0x4ff   : > { %p1716_p11 = pneg %p1715_p10 }
 0x501   : > { %p1721_p1 = pnand %p1720_p0, %p1716_p11 }
 0x503   : > { %1724 = shalt.err (!%p1721_p1)
}
 0x504   : > { %1568 = dma.vmem_to_hbm [thread:$0]  (%p1874_p5), %s1411_s2, 256, %s1413_s3, %s1381_s0, %s1779_s18, %s1779_s18, %s1780_s27  }
 0x505 PF: > { %p1584_p2 = scmp.ge.s32.totalorder %s1767_s16, 2  ;;  %s1427_s12 = sand.u32 1, %s1755_s13  }
 0x506   : > { %s1428_s26 = scalar_lea.sflag [#allocation3], %s1427_s12 }
 0x507   : > { %p1576_p3 = pnand %p1584_p2, %p1878_p6 }
 0x509   : > { %p1577_p4 = pneg %p1576_p3 }
 0x50b   : > { %1746 = dma.done.wait (%p1577_p4), %s1428_s26, 256  }
 0x50c   : > { %1748 = vsyncadd (%p1577_p4), %s1428_s26, 4294967040  ;;  %s1438_s20 = scalar_lea.sflag [#allocation7], %s1427_s12 }
 0x50d   : > { %1750 = dma.done.wait (%p1577_p4), %s1438_s20, 256  }
 0x50e   : > { %1752 = vsyncadd (%p1577_p4), %s1438_s20, 4294967040  ;;  %p25_p5 = scmp.ge.s32.totalorder %s1861_s19, 4   ;;  %s2622_s13 = smov %s1759_s14 }
 0x50f   : > { %s2623_s14 = smov %s1763_s15  ;;  %s2624_s15 = smov %s1872_s22 }
 0x510   : > { %s2625_s16 = smov %s1861_s19  ;;  %27 = sbr.rel (!%p25_p5) target bundleno = 11 (0xb), region = 115 }
 0x515   :  { %1444 = vsyncpa [#allocation3], 1 }
 0x516   :  { %1446 = vsyncpa [#allocation3 + $0x1], 1 }
 0x517   :  { %1447 = vsyncpa [#allocation7], 1 }
 0x518   :  { %1449 = vsyncpa [#allocation7 + $0x1], 1 }
 0x519   :  { %1450 = vsyncpa [#allocation4], 1 }
 0x51a   :  { %1452 = vsyncpa [#allocation4 + $0x1], 1 }

</bundles_post_ra>
